<compile_context>
chip_gen: v6e
topology: v6e:2x2x1
jax: 0.10.0
libtpu: 0.0.40
codegen_flags: <defaults>
</compile_context>

<pallas_src>
import jax
import jax.numpy as jnp
from jax.experimental import pallas as pl
from jax.experimental.pallas import tpu as pltpu


# ----------------------------------------------------------------------------
# Pallas kernel
# ----------------------------------------------------------------------------
def my_lstm_kernel(
    x_ref,                       # (T*B, I)   time-major flat input (row = t*B + b)
    h00_ref, c00_ref,            # (B, H)     layer-0 initial state
    h01_ref, c01_ref,            # (B, H)     layer-1 initial state
    wih0_ref, whh0_ref, b0_ref,  # (I, 4H), (H, 4H), (1, 4H)
    wih1_ref, whh1_ref, b1_ref,  # (H, 4H), (H, 4H), (1, 4H)
    w1_ref, bb1_ref,             # (H, H), (1, H)        reg[0]
    w2_ref, bb2_ref,             # (H, 1), (1, 1)        reg[2]
    smix_ref, bfbig_ref,         # (B*P, T*B), (B*P, 1)  fused time-mix + batch-select
    out_ref,                     # (B*P, 1)
    gx0_ref,                     # scratch (T*B, 4H)  layer-0 input-side gates
    h1all_ref,                   # scratch (T*B, H)   layer-1 hidden states (row=t*B+b)
):
    TB = x_ref.shape[0]
    B, H = h00_ref.shape
    T = TB // B
    H4 = 4 * H

    def cell(g, c):
        # PyTorch gate order (i, f, g, o); 2 EUP launches over the full 4H lanes.
        s = jax.nn.sigmoid(g)
        th = jnp.tanh(g)
        i = s[:, 0 * H:1 * H]
        f = s[:, 1 * H:2 * H]
        o = s[:, 3 * H:4 * H]
        gg = th[:, 2 * H:3 * H]
        c_new = f * c + i * gg
        h_new = o * jnp.tanh(c_new)
        return h_new, c_new

    # ---- Bulk layer-0 input-side gates: one 2-D (T*B, I) x (I, 4H) MXU pass,
    #      bias folded in, spilled to VMEM scratch (per-step slices are plain vlds).
    gx0_ref[...] = (
        jnp.dot(x_ref[...], wih0_ref[...], preferred_element_type=jnp.float32)
        + b0_ref[...]
    )

    # Hoisted weight / bias loads for the recurrence (kept live in vregs).
    whh0 = whh0_ref[...]                                  # (H, 4H)
    whh1 = whh1_ref[...]                                  # (H, 4H)
    wih1 = wih1_ref[...]                                  # (H, 4H)
    b1v = jnp.broadcast_to(b1_ref[...], (B, H4))          # hoisted out of the loop

    # ---- Prologue: layer-0 step 0 -------------------------------------------
    g0 = gx0_ref[0:B, :] + jnp.dot(h00_ref[...], whh0,
                                   preferred_element_type=jnp.float32)
    h0_prev, c0 = cell(g0, c00_ref[...])
    # layer-1 input-side gates for step 0 (off the recurrence critical chain)
    gx1_prev = jnp.dot(h0_prev, wih1, preferred_element_type=jnp.float32) + b1v

    h1_prev = h01_ref[...]
    c1 = c01_ref[...]

    # ---- Wavefront: layer-0 step t interleaved with layer-1 step t-1 ---------
    # The two cells inside one iteration are data-independent, so the MXU/EUP/VPU
    # pipeline them; serial path ~T+1 cell latencies instead of 2T.
    for t in range(1, T):                                  # fully unrolled (T static)
        # layer-0 step t
        g0 = gx0_ref[t * B:(t + 1) * B, :] + jnp.dot(
            h0_prev, whh0, preferred_element_type=jnp.float32)
        h0_new, c0 = cell(g0, c0)

        # layer-1 step t-1 (independent of layer-0 step t)
        g1 = gx1_prev + jnp.dot(h1_prev, whh1, preferred_element_type=jnp.float32)
        h1_new, c1 = cell(g1, c1)
        h1all_ref[(t - 1) * B:t * B, :] = h1_new           # contiguous (B, H) row store

        # next layer-1 input-side gates (off the critical chain)
        gx1_prev = jnp.dot(h0_new, wih1, preferred_element_type=jnp.float32) + b1v

        h0_prev = h0_new
        h1_prev = h1_new

    # ---- Epilogue: layer-1 step T-1 ------------------------------------------
    g1 = gx1_prev + jnp.dot(h1_prev, whh1, preferred_element_type=jnp.float32)
    h1_new, c1 = cell(g1, c1)
    h1all_ref[(T - 1) * B:T * B, :] = h1_new

    # ---- Tail: reg MLP as flat 2-D matmuls + fused time-mix / batch-select ----
    lo = h1all_ref[...]                                               # (T*B, H)
    hid = jnp.tanh(
        jnp.dot(lo, w1_ref[...], preferred_element_type=jnp.float32) + bb1_ref[...]
    )                                                                 # (T*B, H)
    y = jnp.dot(hid, w2_ref[...], preferred_element_type=jnp.float32) + bb2_ref[...]
    # out_flat[b*P + p] = sum_t wf[p, t] * y[t*B + b] + bf[p]
    out_ref[...] = (
        jnp.dot(smix_ref[...], y, preferred_element_type=jnp.float32)
        + bfbig_ref[...]
    )


# ----------------------------------------------------------------------------
# Wrapper
# ----------------------------------------------------------------------------
def my_lstm_forward(x, h_init, c_init, params):
    """x: (B, T, I); h_init/c_init: (num_layers=2, B, H); returns (B, P, 1)."""
    (wih0T, whh0T, b0, wih1T, whh1T, b1l,
     w1T, bb1, w2T, bb2, wf, bf) = params
    B, T, I = x.shape
    H = whh0T.shape[0]
    P = wf.shape[0]

    # (B, T, I) -> time-major flat (T*B, I); row index = t*B + b  (free XLA-side).
    x_flat = jnp.transpose(x, (1, 0, 2)).reshape(T * B, I)

    # Fused "time-mix + batch-select" matrix (wrapper-side constant):
    #   smix[b*P + p, t*B + b'] = wf[p, t] * (b == b')
    eye_b = jnp.eye(B, dtype=jnp.float32)
    smix = jnp.einsum('bc,pt->bptc', eye_b, wf).reshape(B * P, T * B)
    bf_big = jnp.tile(bf, (B, 1))                          # (B*P, 1)

    vmem = pl.BlockSpec(memory_space=pltpu.MemorySpace.VMEM)
    inputs = (x_flat, h_init[0], c_init[0], h_init[1], c_init[1],
              wih0T, whh0T, b0, wih1T, whh1T, b1l,
              w1T, bb1, w2T, bb2, smix, bf_big)

    out_flat = pl.pallas_call(
        my_lstm_kernel,
        out_shape=jax.ShapeDtypeStruct((B * P, 1), jnp.float32),
        in_specs=[vmem] * len(inputs),
        out_specs=vmem,
        scratch_shapes=[
            pltpu.VMEM((T * B, 4 * H), jnp.float32),   # gx0: layer-0 input-side gates
            pltpu.VMEM((T * B, H), jnp.float32),       # h1all: layer-1 hidden states
        ],
    )(*inputs)
    # (B*P, 1) -> (B, P, 1): free wrapper-side reshape.
    return out_flat.reshape(B, P, 1)


# ----------------------------------------------------------------------------
# Pure-JAX reference (mirrors PyTorch nn.LSTM + reg + Linear semantics)
# ----------------------------------------------------------------------------
def reference_forward(x, h_init, c_init, params):
    (wih0T, whh0T, b0, wih1T, whh1T, b1l,
     w1T, bb1, w2T, bb2, wf, bf) = params
    B, T, I = x.shape
    P = wf.shape[0]

    def cell(x_t, h, c, wihT, whhT, b):
        g = x_t @ wihT + h @ whhT + b
        i, f, gg, o = jnp.split(g, 4, axis=1)
        c_new = jax.nn.sigmoid(f) * c + jax.nn.sigmoid(i) * jnp.tanh(gg)
        h_new = jax.nn.sigmoid(o) * jnp.tanh(c_new)
        return h_new, c_new

    h0, c0 = h_init[0], c_init[0]
    h1, c1 = h_init[1], c_init[1]
    outs = []
    for t in range(T):
        h0, c0 = cell(x[:, t, :], h0, c0, wih0T, whh0T, b0)
        h1, c1 = cell(h0, h1, c1, wih1T, whh1T, b1l)
        outs.append(h1)
    lstm_out = jnp.stack(outs, axis=1)                       # (B, T, H)
    hid = jnp.tanh(lstm_out @ w1T + bb1)                     # (B, T, H)
    y = hid @ w2T + bb2                                      # (B, T, 1)
    yp = jnp.transpose(y, (0, 2, 1))                         # (B, 1, T)
    out = yp @ wf.T + bf.reshape(1, 1, P)                    # (B, 1, P)
    return jnp.transpose(out, (0, 2, 1))                     # (B, P, 1)


# ----------------------------------------------------------------------------
# Deterministic parameter construction (shapes follow my_LSTM.__init__)
# ----------------------------------------------------------------------------
def make_params(key, input_size, hidden_size, seq_len, pred_len, output_size=1):
    ks = jax.random.split(key, 16)
    H, I, T, P = hidden_size, input_size, seq_len, pred_len
    s = 0.1
    # LSTM layer 0
    wih0T = s * jax.random.normal(ks[0], (I, 4 * H), jnp.float32)
    whh0T = s * jax.random.normal(ks[1], (H, 4 * H), jnp.float32)
    b0 = s * jax.random.normal(ks[2], (1, 4 * H), jnp.float32)   # b_ih0 + b_hh0 combined
    # LSTM layer 1
    wih1T = s * jax.random.normal(ks[3], (H, 4 * H), jnp.float32)
    whh1T = s * jax.random.normal(ks[4], (H, 4 * H), jnp.float32)
    b1l = s * jax.random.normal(ks[5], (1, 4 * H), jnp.float32)
    # reg = Linear(H, H) -> Tanh -> Linear(H, output_size)
    w1T = s * jax.random.normal(ks[6], (H, H), jnp.float32)
    bb1 = s * jax.random.normal(ks[7], (1, H), jnp.float32)
    w2T = s * jax.random.normal(ks[8], (H, output_size), jnp.float32)
    bb2 = s * jax.random.normal(ks[9], (1, output_size), jnp.float32)
    # Linear(seq_len, pred_len)
    wf = s * jax.random.normal(ks[10], (P, T), jnp.float32)
    bf = s * jax.random.normal(ks[11], (P, 1), jnp.float32)
    return (wih0T, whh0T, b0, wih1T, whh1T, b1l, w1T, bb1, w2T, bb2, wf, bf)


if __name__ == "__main__":
    # Small shapes consistent with the module's forward
    B, T, I = 2, 8, 12          # batch, seq_len, input_size
    H, P = 32, 4                # hidden_size, pred_len
    NUM_LAYERS = 2

    key = jax.random.PRNGKey(0)
    kx, kh, kc, kp = jax.random.split(key, 4)

    x = jax.random.normal(kx, (B, T, I), jnp.float32)
    # initial_hidden_state: (num_layers, batch, hidden) — deterministic here (the
    # PyTorch module draws it with torch.randn inside forward).
    h_init = jax.random.normal(kh, (NUM_LAYERS, B, H), jnp.float32)
    c_init = jax.random.normal(kc, (NUM_LAYERS, B, H), jnp.float32)
    params = make_params(kp, I, H, T, P)

    out = my_lstm_forward(x, h_init, c_init, params)
    out = jax.block_until_ready(out)

    ref = reference_forward(x, h_init, c_init, params)
    assert out.shape == (B, P, 1), out.shape
    assert jnp.allclose(out, ref, atol=1e-4, rtol=1e-4), (
        f"max abs err {jnp.max(jnp.abs(out - ref))}")

    print("KERNEL_OK")
</pallas_src>

<mosaic_0001>
module attributes {stable_mosaic.version = 11 : i64} {
  func.func @my_lstm_kernel(%arg0: memref<16x12xf32, #tpu.memory_space<vmem>>, %arg1: memref<2x32xf32, #tpu.memory_space<vmem>>, %arg2: memref<2x32xf32, #tpu.memory_space<vmem>>, %arg3: memref<2x32xf32, #tpu.memory_space<vmem>>, %arg4: memref<2x32xf32, #tpu.memory_space<vmem>>, %arg5: memref<12x128xf32, #tpu.memory_space<vmem>>, %arg6: memref<32x128xf32, #tpu.memory_space<vmem>>, %arg7: memref<1x128xf32, #tpu.memory_space<vmem>>, %arg8: memref<32x128xf32, #tpu.memory_space<vmem>>, %arg9: memref<32x128xf32, #tpu.memory_space<vmem>>, %arg10: memref<1x128xf32, #tpu.memory_space<vmem>>, %arg11: memref<32x32xf32, #tpu.memory_space<vmem>>, %arg12: memref<1x32xf32, #tpu.memory_space<vmem>>, %arg13: memref<32x1xf32, #tpu.memory_space<vmem>>, %arg14: memref<1x1xf32, #tpu.memory_space<vmem>>, %arg15: memref<8x16xf32, #tpu.memory_space<vmem>>, %arg16: memref<8x1xf32, #tpu.memory_space<vmem>>, %arg17: memref<8x1xf32, #tpu.memory_space<vmem>>, %arg18: memref<16x128xf32, #tpu.memory_space<vmem>>, %arg19: memref<16x32xf32, #tpu.memory_space<vmem>>) attributes {dimension_semantics = [], scalar_prefetch = 0 : i64, scratch_operands = 2 : i64, tpu.core_type = #tpu.core_type<tc>} {
    %c0 = arith.constant 0 : index
    %c0_0 = arith.constant 0 : index
    %0 = vector.load %arg0[%c0, %c0_0] : memref<16x12xf32, #tpu.memory_space<vmem>>, vector<16x12xf32>
    %c0_1 = arith.constant 0 : index
    %c0_2 = arith.constant 0 : index
    %1 = vector.load %arg5[%c0_1, %c0_2] : memref<12x128xf32, #tpu.memory_space<vmem>>, vector<12x128xf32>
    %cst = arith.constant dense<0.000000e+00> : vector<16x128xf32>
    %2 = tpu.matmul %0, %1, %cst {dimension_numbers = #tpu.dot_dimension_numbers<[1], [0], [0], [1], [0, 0, 1, 1], [], []>} : vector<16x12xf32>, vector<12x128xf32>, vector<16x128xf32> -> vector<16x128xf32>
    %c0_3 = arith.constant 0 : index
    %c0_4 = arith.constant 0 : index
    %3 = vector.load %arg7[%c0_3, %c0_4] : memref<1x128xf32, #tpu.memory_space<vmem>>, vector<1x128xf32>
    %4 = vector.broadcast %3 : vector<1x128xf32> to vector<16x128xf32>
    %5 = arith.addf %2, %4 : vector<16x128xf32>
    %c0_5 = arith.constant 0 : index
    %c0_6 = arith.constant 0 : index
    %6 = vector.load %arg18[%c0_5, %c0_6] : memref<16x128xf32, #tpu.memory_space<vmem>>, vector<16x128xf32>
    tpu.vector_store %arg18[%c0_5, %c0_6], %5 {strides = array<i32>} : memref<16x128xf32, #tpu.memory_space<vmem>>, vector<16x128xf32>,
    %c0_7 = arith.constant 0 : index
    %c0_8 = arith.constant 0 : index
    %7 = vector.load %arg6[%c0_7, %c0_8] : memref<32x128xf32, #tpu.memory_space<vmem>>, vector<32x128xf32>
    %c0_9 = arith.constant 0 : index
    %c0_10 = arith.constant 0 : index
    %8 = vector.load %arg9[%c0_9, %c0_10] : memref<32x128xf32, #tpu.memory_space<vmem>>, vector<32x128xf32>
    %c0_11 = arith.constant 0 : index
    %c0_12 = arith.constant 0 : index
    %9 = vector.load %arg8[%c0_11, %c0_12] : memref<32x128xf32, #tpu.memory_space<vmem>>, vector<32x128xf32>
    %c0_13 = arith.constant 0 : index
    %c0_14 = arith.constant 0 : index
    %10 = vector.load %arg10[%c0_13, %c0_14] : memref<1x128xf32, #tpu.memory_space<vmem>>, vector<1x128xf32>
    %11 = vector.shape_cast %10 : vector<1x128xf32> to vector<1x128xf32>
    %12 = vector.broadcast %11 : vector<1x128xf32> to vector<2x128xf32>
    %c0_15 = arith.constant 0 : index
    %c0_16 = arith.constant 0 : index
    %13 = vector.load %arg18[%c0_15, %c0_16] : memref<16x128xf32, #tpu.memory_space<vmem>>, vector<2x128xf32>
    %c0_17 = arith.constant 0 : index
    %c0_18 = arith.constant 0 : index
    %14 = vector.load %arg1[%c0_17, %c0_18] : memref<2x32xf32, #tpu.memory_space<vmem>>, vector<2x32xf32>
    %cst_19 = arith.constant dense<0.000000e+00> : vector<2x128xf32>
    %15 = tpu.matmul %14, %7, %cst_19 {dimension_numbers = #tpu.dot_dimension_numbers<[1], [0], [0], [1], [0, 0, 1, 1], [], []>} : vector<2x32xf32>, vector<32x128xf32>, vector<2x128xf32> -> vector<2x128xf32>
    %16 = arith.addf %13, %15 : vector<2x128xf32>
    %c0_20 = arith.constant 0 : index
    %c0_21 = arith.constant 0 : index
    %17 = vector.load %arg2[%c0_20, %c0_21] : memref<2x32xf32, #tpu.memory_space<vmem>>, vector<2x32xf32>
    %18 = arith.negf %16 : vector<2x128xf32>
    %19 = math.exp %18 : vector<2x128xf32>
    %cst_22 = arith.constant 1.000000e+00 : f32
    %20 = vector.broadcast %cst_22 : f32 to vector<2x128xf32>
    %21 = arith.addf %20, %19 : vector<2x128xf32>
    %22 = arith.divf %20, %21 : vector<2x128xf32>
    %23 = math.tanh %16 : vector<2x128xf32>
    %24 = vector.extract_strided_slice %22 {offsets = [0, 0], sizes = [2, 32], strides = [1, 1]} : vector<2x128xf32> to vector<2x32xf32>
    %25 = vector.extract_strided_slice %22 {offsets = [0, 32], sizes = [2, 32], strides = [1, 1]} : vector<2x128xf32> to vector<2x32xf32>
    %26 = vector.extract_strided_slice %22 {offsets = [0, 96], sizes = [2, 32], strides = [1, 1]} : vector<2x128xf32> to vector<2x32xf32>
    %27 = vector.extract_strided_slice %23 {offsets = [0, 64], sizes = [2, 32], strides = [1, 1]} : vector<2x128xf32> to vector<2x32xf32>
    %28 = arith.mulf %25, %17 : vector<2x32xf32>
    %29 = arith.mulf %24, %27 : vector<2x32xf32>
    %30 = arith.addf %28, %29 : vector<2x32xf32>
    %31 = math.tanh %30 : vector<2x32xf32>
    %32 = arith.mulf %26, %31 : vector<2x32xf32>
    %cst_23 = arith.constant dense<0.000000e+00> : vector<2x128xf32>
    %33 = tpu.matmul %32, %9, %cst_23 {dimension_numbers = #tpu.dot_dimension_numbers<[1], [0], [0], [1], [0, 0, 1, 1], [], []>} : vector<2x32xf32>, vector<32x128xf32>, vector<2x128xf32> -> vector<2x128xf32>
    %34 = arith.addf %33, %12 : vector<2x128xf32>
    %c0_24 = arith.constant 0 : index
    %c0_25 = arith.constant 0 : index
    %35 = vector.load %arg3[%c0_24, %c0_25] : memref<2x32xf32, #tpu.memory_space<vmem>>, vector<2x32xf32>
    %c0_26 = arith.constant 0 : index
    %c0_27 = arith.constant 0 : index
    %36 = vector.load %arg4[%c0_26, %c0_27] : memref<2x32xf32, #tpu.memory_space<vmem>>, vector<2x32xf32>
    %c2 = arith.constant 2 : index
    %c0_28 = arith.constant 0 : index
    %37 = vector.load %arg18[%c2, %c0_28] : memref<16x128xf32, #tpu.memory_space<vmem>>, vector<2x128xf32>
    %cst_29 = arith.constant dense<0.000000e+00> : vector<2x128xf32>
    %38 = tpu.matmul %32, %7, %cst_29 {dimension_numbers = #tpu.dot_dimension_numbers<[1], [0], [0], [1], [0, 0, 1, 1], [], []>} : vector<2x32xf32>, vector<32x128xf32>, vector<2x128xf32> -> vector<2x128xf32>
    %39 = arith.addf %37, %38 : vector<2x128xf32>
    %40 = arith.negf %39 : vector<2x128xf32>
    %41 = math.exp %40 : vector<2x128xf32>
    %cst_30 = arith.constant 1.000000e+00 : f32
    %42 = vector.broadcast %cst_30 : f32 to vector<2x128xf32>
    %43 = arith.addf %42, %41 : vector<2x128xf32>
    %44 = arith.divf %42, %43 : vector<2x128xf32>
    %45 = math.tanh %39 : vector<2x128xf32>
    %46 = vector.extract_strided_slice %44 {offsets = [0, 0], sizes = [2, 32], strides = [1, 1]} : vector<2x128xf32> to vector<2x32xf32>
    %47 = vector.extract_strided_slice %44 {offsets = [0, 32], sizes = [2, 32], strides = [1, 1]} : vector<2x128xf32> to vector<2x32xf32>
    %48 = vector.extract_strided_slice %44 {offsets = [0, 96], sizes = [2, 32], strides = [1, 1]} : vector<2x128xf32> to vector<2x32xf32>
    %49 = vector.extract_strided_slice %45 {offsets = [0, 64], sizes = [2, 32], strides = [1, 1]} : vector<2x128xf32> to vector<2x32xf32>
    %50 = arith.mulf %47, %30 : vector<2x32xf32>
    %51 = arith.mulf %46, %49 : vector<2x32xf32>
    %52 = arith.addf %50, %51 : vector<2x32xf32>
    %53 = math.tanh %52 : vector<2x32xf32>
    %54 = arith.mulf %48, %53 : vector<2x32xf32>
    %cst_31 = arith.constant dense<0.000000e+00> : vector<2x128xf32>
    %55 = tpu.matmul %35, %8, %cst_31 {dimension_numbers = #tpu.dot_dimension_numbers<[1], [0], [0], [1], [0, 0, 1, 1], [], []>} : vector<2x32xf32>, vector<32x128xf32>, vector<2x128xf32> -> vector<2x128xf32>
    %56 = arith.addf %34, %55 : vector<2x128xf32>
    %57 = arith.negf %56 : vector<2x128xf32>
    %58 = math.exp %57 : vector<2x128xf32>
    %cst_32 = arith.constant 1.000000e+00 : f32
    %59 = vector.broadcast %cst_32 : f32 to vector<2x128xf32>
    %60 = arith.addf %59, %58 : vector<2x128xf32>
    %61 = arith.divf %59, %60 : vector<2x128xf32>
    %62 = math.tanh %56 : vector<2x128xf32>
    %63 = vector.extract_strided_slice %61 {offsets = [0, 0], sizes = [2, 32], strides = [1, 1]} : vector<2x128xf32> to vector<2x32xf32>
    %64 = vector.extract_strided_slice %61 {offsets = [0, 32], sizes = [2, 32], strides = [1, 1]} : vector<2x128xf32> to vector<2x32xf32>
    %65 = vector.extract_strided_slice %61 {offsets = [0, 96], sizes = [2, 32], strides = [1, 1]} : vector<2x128xf32> to vector<2x32xf32>
    %66 = vector.extract_strided_slice %62 {offsets = [0, 64], sizes = [2, 32], strides = [1, 1]} : vector<2x128xf32> to vector<2x32xf32>
    %67 = arith.mulf %64, %36 : vector<2x32xf32>
    %68 = arith.mulf %63, %66 : vector<2x32xf32>
    %69 = arith.addf %67, %68 : vector<2x32xf32>
    %70 = math.tanh %69 : vector<2x32xf32>
    %71 = arith.mulf %65, %70 : vector<2x32xf32>
    %c0_33 = arith.constant 0 : index
    %c0_34 = arith.constant 0 : index
    %72 = vector.load %arg19[%c0_33, %c0_34] : memref<16x32xf32, #tpu.memory_space<vmem>>, vector<2x32xf32>
    tpu.vector_store %arg19[%c0_33, %c0_34], %71 {strides = array<i32>} : memref<16x32xf32, #tpu.memory_space<vmem>>, vector<2x32xf32>,
    %cst_35 = arith.constant dense<0.000000e+00> : vector<2x128xf32>
    %73 = tpu.matmul %54, %9, %cst_35 {dimension_numbers = #tpu.dot_dimension_numbers<[1], [0], [0], [1], [0, 0, 1, 1], [], []>} : vector<2x32xf32>, vector<32x128xf32>, vector<2x128xf32> -> vector<2x128xf32>
    %74 = arith.addf %73, %12 : vector<2x128xf32>
    %c4 = arith.constant 4 : index
    %c0_36 = arith.constant 0 : index
    %75 = vector.load %arg18[%c4, %c0_36] : memref<16x128xf32, #tpu.memory_space<vmem>>, vector<2x128xf32>
    %cst_37 = arith.constant dense<0.000000e+00> : vector<2x128xf32>
    %76 = tpu.matmul %54, %7, %cst_37 {dimension_numbers = #tpu.dot_dimension_numbers<[1], [0], [0], [1], [0, 0, 1, 1], [], []>} : vector<2x32xf32>, vector<32x128xf32>, vector<2x128xf32> -> vector<2x128xf32>
    %77 = arith.addf %75, %76 : vector<2x128xf32>
    %78 = arith.negf %77 : vector<2x128xf32>
    %79 = math.exp %78 : vector<2x128xf32>
    %cst_38 = arith.constant 1.000000e+00 : f32
    %80 = vector.broadcast %cst_38 : f32 to vector<2x128xf32>
    %81 = arith.addf %80, %79 : vector<2x128xf32>
    %82 = arith.divf %80, %81 : vector<2x128xf32>
    %83 = math.tanh %77 : vector<2x128xf32>
    %84 = vector.extract_strided_slice %82 {offsets = [0, 0], sizes = [2, 32], strides = [1, 1]} : vector<2x128xf32> to vector<2x32xf32>
    %85 = vector.extract_strided_slice %82 {offsets = [0, 32], sizes = [2, 32], strides = [1, 1]} : vector<2x128xf32> to vector<2x32xf32>
    %86 = vector.extract_strided_slice %82 {offsets = [0, 96], sizes = [2, 32], strides = [1, 1]} : vector<2x128xf32> to vector<2x32xf32>
    %87 = vector.extract_strided_slice %83 {offsets = [0, 64], sizes = [2, 32], strides = [1, 1]} : vector<2x128xf32> to vector<2x32xf32>
    %88 = arith.mulf %85, %52 : vector<2x32xf32>
    %89 = arith.mulf %84, %87 : vector<2x32xf32>
    %90 = arith.addf %88, %89 : vector<2x32xf32>
    %91 = math.tanh %90 : vector<2x32xf32>
    %92 = arith.mulf %86, %91 : vector<2x32xf32>
    %cst_39 = arith.constant dense<0.000000e+00> : vector<2x128xf32>
    %93 = tpu.matmul %71, %8, %cst_39 {dimension_numbers = #tpu.dot_dimension_numbers<[1], [0], [0], [1], [0, 0, 1, 1], [], []>} : vector<2x32xf32>, vector<32x128xf32>, vector<2x128xf32> -> vector<2x128xf32>
    %94 = arith.addf %74, %93 : vector<2x128xf32>
    %95 = arith.negf %94 : vector<2x128xf32>
    %96 = math.exp %95 : vector<2x128xf32>
    %cst_40 = arith.constant 1.000000e+00 : f32
    %97 = vector.broadcast %cst_40 : f32 to vector<2x128xf32>
    %98 = arith.addf %97, %96 : vector<2x128xf32>
    %99 = arith.divf %97, %98 : vector<2x128xf32>
    %100 = math.tanh %94 : vector<2x128xf32>
    %101 = vector.extract_strided_slice %99 {offsets = [0, 0], sizes = [2, 32], strides = [1, 1]} : vector<2x128xf32> to vector<2x32xf32>
    %102 = vector.extract_strided_slice %99 {offsets = [0, 32], sizes = [2, 32], strides = [1, 1]} : vector<2x128xf32> to vector<2x32xf32>
    %103 = vector.extract_strided_slice %99 {offsets = [0, 96], sizes = [2, 32], strides = [1, 1]} : vector<2x128xf32> to vector<2x32xf32>
    %104 = vector.extract_strided_slice %100 {offsets = [0, 64], sizes = [2, 32], strides = [1, 1]} : vector<2x128xf32> to vector<2x32xf32>
    %105 = arith.mulf %102, %69 : vector<2x32xf32>
    %106 = arith.mulf %101, %104 : vector<2x32xf32>
    %107 = arith.addf %105, %106 : vector<2x32xf32>
    %108 = math.tanh %107 : vector<2x32xf32>
    %109 = arith.mulf %103, %108 : vector<2x32xf32>
    %c2_41 = arith.constant 2 : index
    %c0_42 = arith.constant 0 : index
    %110 = vector.load %arg19[%c2_41, %c0_42] : memref<16x32xf32, #tpu.memory_space<vmem>>, vector<2x32xf32>
    tpu.vector_store %arg19[%c2_41, %c0_42], %109 {strides = array<i32>} : memref<16x32xf32, #tpu.memory_space<vmem>>, vector<2x32xf32>,
    %cst_43 = arith.constant dense<0.000000e+00> : vector<2x128xf32>
    %111 = tpu.matmul %92, %9, %cst_43 {dimension_numbers = #tpu.dot_dimension_numbers<[1], [0], [0], [1], [0, 0, 1, 1], [], []>} : vector<2x32xf32>, vector<32x128xf32>, vector<2x128xf32> -> vector<2x128xf32>
    %112 = arith.addf %111, %12 : vector<2x128xf32>
    %c6 = arith.constant 6 : index
    %c0_44 = arith.constant 0 : index
    %113 = vector.load %arg18[%c6, %c0_44] : memref<16x128xf32, #tpu.memory_space<vmem>>, vector<2x128xf32>
    %cst_45 = arith.constant dense<0.000000e+00> : vector<2x128xf32>
    %114 = tpu.matmul %92, %7, %cst_45 {dimension_numbers = #tpu.dot_dimension_numbers<[1], [0], [0], [1], [0, 0, 1, 1], [], []>} : vector<2x32xf32>, vector<32x128xf32>, vector<2x128xf32> -> vector<2x128xf32>
    %115 = arith.addf %113, %114 : vector<2x128xf32>
    %116 = arith.negf %115 : vector<2x128xf32>
    %117 = math.exp %116 : vector<2x128xf32>
    %cst_46 = arith.constant 1.000000e+00 : f32
    %118 = vector.broadcast %cst_46 : f32 to vector<2x128xf32>
    %119 = arith.addf %118, %117 : vector<2x128xf32>
    %120 = arith.divf %118, %119 : vector<2x128xf32>
    %121 = math.tanh %115 : vector<2x128xf32>
    %122 = vector.extract_strided_slice %120 {offsets = [0, 0], sizes = [2, 32], strides = [1, 1]} : vector<2x128xf32> to vector<2x32xf32>
    %123 = vector.extract_strided_slice %120 {offsets = [0, 32], sizes = [2, 32], strides = [1, 1]} : vector<2x128xf32> to vector<2x32xf32>
    %124 = vector.extract_strided_slice %120 {offsets = [0, 96], sizes = [2, 32], strides = [1, 1]} : vector<2x128xf32> to vector<2x32xf32>
    %125 = vector.extract_strided_slice %121 {offsets = [0, 64], sizes = [2, 32], strides = [1, 1]} : vector<2x128xf32> to vector<2x32xf32>
    %126 = arith.mulf %123, %90 : vector<2x32xf32>
    %127 = arith.mulf %122, %125 : vector<2x32xf32>
    %128 = arith.addf %126, %127 : vector<2x32xf32>
    %129 = math.tanh %128 : vector<2x32xf32>
    %130 = arith.mulf %124, %129 : vector<2x32xf32>
    %cst_47 = arith.constant dense<0.000000e+00> : vector<2x128xf32>
    %131 = tpu.matmul %109, %8, %cst_47 {dimension_numbers = #tpu.dot_dimension_numbers<[1], [0], [0], [1], [0, 0, 1, 1], [], []>} : vector<2x32xf32>, vector<32x128xf32>, vector<2x128xf32> -> vector<2x128xf32>
    %132 = arith.addf %112, %131 : vector<2x128xf32>
    %133 = arith.negf %132 : vector<2x128xf32>
    %134 = math.exp %133 : vector<2x128xf32>
    %cst_48 = arith.constant 1.000000e+00 : f32
    %135 = vector.broadcast %cst_48 : f32 to vector<2x128xf32>
    %136 = arith.addf %135, %134 : vector<2x128xf32>
    %137 = arith.divf %135, %136 : vector<2x128xf32>
    %138 = math.tanh %132 : vector<2x128xf32>
    %139 = vector.extract_strided_slice %137 {offsets = [0, 0], sizes = [2, 32], strides = [1, 1]} : vector<2x128xf32> to vector<2x32xf32>
    %140 = vector.extract_strided_slice %137 {offsets = [0, 32], sizes = [2, 32], strides = [1, 1]} : vector<2x128xf32> to vector<2x32xf32>
    %141 = vector.extract_strided_slice %137 {offsets = [0, 96], sizes = [2, 32], strides = [1, 1]} : vector<2x128xf32> to vector<2x32xf32>
    %142 = vector.extract_strided_slice %138 {offsets = [0, 64], sizes = [2, 32], strides = [1, 1]} : vector<2x128xf32> to vector<2x32xf32>
    %143 = arith.mulf %140, %107 : vector<2x32xf32>
    %144 = arith.mulf %139, %142 : vector<2x32xf32>
    %145 = arith.addf %143, %144 : vector<2x32xf32>
    %146 = math.tanh %145 : vector<2x32xf32>
    %147 = arith.mulf %141, %146 : vector<2x32xf32>
    %c4_49 = arith.constant 4 : index
    %c0_50 = arith.constant 0 : index
    %148 = vector.load %arg19[%c4_49, %c0_50] : memref<16x32xf32, #tpu.memory_space<vmem>>, vector<2x32xf32>
    tpu.vector_store %arg19[%c4_49, %c0_50], %147 {strides = array<i32>} : memref<16x32xf32, #tpu.memory_space<vmem>>, vector<2x32xf32>,
    %cst_51 = arith.constant dense<0.000000e+00> : vector<2x128xf32>
    %149 = tpu.matmul %130, %9, %cst_51 {dimension_numbers = #tpu.dot_dimension_numbers<[1], [0], [0], [1], [0, 0, 1, 1], [], []>} : vector<2x32xf32>, vector<32x128xf32>, vector<2x128xf32> -> vector<2x128xf32>
    %150 = arith.addf %149, %12 : vector<2x128xf32>
    %c8 = arith.constant 8 : index
    %c0_52 = arith.constant 0 : index
    %151 = vector.load %arg18[%c8, %c0_52] : memref<16x128xf32, #tpu.memory_space<vmem>>, vector<2x128xf32>
    %cst_53 = arith.constant dense<0.000000e+00> : vector<2x128xf32>
    %152 = tpu.matmul %130, %7, %cst_53 {dimension_numbers = #tpu.dot_dimension_numbers<[1], [0], [0], [1], [0, 0, 1, 1], [], []>} : vector<2x32xf32>, vector<32x128xf32>, vector<2x128xf32> -> vector<2x128xf32>
    %153 = arith.addf %151, %152 : vector<2x128xf32>
    %154 = arith.negf %153 : vector<2x128xf32>
    %155 = math.exp %154 : vector<2x128xf32>
    %cst_54 = arith.constant 1.000000e+00 : f32
    %156 = vector.broadcast %cst_54 : f32 to vector<2x128xf32>
    %157 = arith.addf %156, %155 : vector<2x128xf32>
    %158 = arith.divf %156, %157 : vector<2x128xf32>
    %159 = math.tanh %153 : vector<2x128xf32>
    %160 = vector.extract_strided_slice %158 {offsets = [0, 0], sizes = [2, 32], strides = [1, 1]} : vector<2x128xf32> to vector<2x32xf32>
    %161 = vector.extract_strided_slice %158 {offsets = [0, 32], sizes = [2, 32], strides = [1, 1]} : vector<2x128xf32> to vector<2x32xf32>
    %162 = vector.extract_strided_slice %158 {offsets = [0, 96], sizes = [2, 32], strides = [1, 1]} : vector<2x128xf32> to vector<2x32xf32>
    %163 = vector.extract_strided_slice %159 {offsets = [0, 64], sizes = [2, 32], strides = [1, 1]} : vector<2x128xf32> to vector<2x32xf32>
    %164 = arith.mulf %161, %128 : vector<2x32xf32>
    %165 = arith.mulf %160, %163 : vector<2x32xf32>
    %166 = arith.addf %164, %165 : vector<2x32xf32>
    %167 = math.tanh %166 : vector<2x32xf32>
    %168 = arith.mulf %162, %167 : vector<2x32xf32>
    %cst_55 = arith.constant dense<0.000000e+00> : vector<2x128xf32>
    %169 = tpu.matmul %147, %8, %cst_55 {dimension_numbers = #tpu.dot_dimension_numbers<[1], [0], [0], [1], [0, 0, 1, 1], [], []>} : vector<2x32xf32>, vector<32x128xf32>, vector<2x128xf32> -> vector<2x128xf32>
    %170 = arith.addf %150, %169 : vector<2x128xf32>
    %171 = arith.negf %170 : vector<2x128xf32>
    %172 = math.exp %171 : vector<2x128xf32>
    %cst_56 = arith.constant 1.000000e+00 : f32
    %173 = vector.broadcast %cst_56 : f32 to vector<2x128xf32>
    %174 = arith.addf %173, %172 : vector<2x128xf32>
    %175 = arith.divf %173, %174 : vector<2x128xf32>
    %176 = math.tanh %170 : vector<2x128xf32>
    %177 = vector.extract_strided_slice %175 {offsets = [0, 0], sizes = [2, 32], strides = [1, 1]} : vector<2x128xf32> to vector<2x32xf32>
    %178 = vector.extract_strided_slice %175 {offsets = [0, 32], sizes = [2, 32], strides = [1, 1]} : vector<2x128xf32> to vector<2x32xf32>
    %179 = vector.extract_strided_slice %175 {offsets = [0, 96], sizes = [2, 32], strides = [1, 1]} : vector<2x128xf32> to vector<2x32xf32>
    %180 = vector.extract_strided_slice %176 {offsets = [0, 64], sizes = [2, 32], strides = [1, 1]} : vector<2x128xf32> to vector<2x32xf32>
    %181 = arith.mulf %178, %145 : vector<2x32xf32>
    %182 = arith.mulf %177, %180 : vector<2x32xf32>
    %183 = arith.addf %181, %182 : vector<2x32xf32>
    %184 = math.tanh %183 : vector<2x32xf32>
    %185 = arith.mulf %179, %184 : vector<2x32xf32>
    %c6_57 = arith.constant 6 : index
    %c0_58 = arith.constant 0 : index
    %186 = vector.load %arg19[%c6_57, %c0_58] : memref<16x32xf32, #tpu.memory_space<vmem>>, vector<2x32xf32>
    tpu.vector_store %arg19[%c6_57, %c0_58], %185 {strides = array<i32>} : memref<16x32xf32, #tpu.memory_space<vmem>>, vector<2x32xf32>,
    %cst_59 = arith.constant dense<0.000000e+00> : vector<2x128xf32>
    %187 = tpu.matmul %168, %9, %cst_59 {dimension_numbers = #tpu.dot_dimension_numbers<[1], [0], [0], [1], [0, 0, 1, 1], [], []>} : vector<2x32xf32>, vector<32x128xf32>, vector<2x128xf32> -> vector<2x128xf32>
    %188 = arith.addf %187, %12 : vector<2x128xf32>
    %c10 = arith.constant 10 : index
    %c0_60 = arith.constant 0 : index
    %189 = vector.load %arg18[%c10, %c0_60] : memref<16x128xf32, #tpu.memory_space<vmem>>, vector<2x128xf32>
    %cst_61 = arith.constant dense<0.000000e+00> : vector<2x128xf32>
    %190 = tpu.matmul %168, %7, %cst_61 {dimension_numbers = #tpu.dot_dimension_numbers<[1], [0], [0], [1], [0, 0, 1, 1], [], []>} : vector<2x32xf32>, vector<32x128xf32>, vector<2x128xf32> -> vector<2x128xf32>
    %191 = arith.addf %189, %190 : vector<2x128xf32>
    %192 = arith.negf %191 : vector<2x128xf32>
    %193 = math.exp %192 : vector<2x128xf32>
    %cst_62 = arith.constant 1.000000e+00 : f32
    %194 = vector.broadcast %cst_62 : f32 to vector<2x128xf32>
    %195 = arith.addf %194, %193 : vector<2x128xf32>
    %196 = arith.divf %194, %195 : vector<2x128xf32>
    %197 = math.tanh %191 : vector<2x128xf32>
    %198 = vector.extract_strided_slice %196 {offsets = [0, 0], sizes = [2, 32], strides = [1, 1]} : vector<2x128xf32> to vector<2x32xf32>
    %199 = vector.extract_strided_slice %196 {offsets = [0, 32], sizes = [2, 32], strides = [1, 1]} : vector<2x128xf32> to vector<2x32xf32>
    %200 = vector.extract_strided_slice %196 {offsets = [0, 96], sizes = [2, 32], strides = [1, 1]} : vector<2x128xf32> to vector<2x32xf32>
    %201 = vector.extract_strided_slice %197 {offsets = [0, 64], sizes = [2, 32], strides = [1, 1]} : vector<2x128xf32> to vector<2x32xf32>
    %202 = arith.mulf %199, %166 : vector<2x32xf32>
    %203 = arith.mulf %198, %201 : vector<2x32xf32>
    %204 = arith.addf %202, %203 : vector<2x32xf32>
    %205 = math.tanh %204 : vector<2x32xf32>
    %206 = arith.mulf %200, %205 : vector<2x32xf32>
    %cst_63 = arith.constant dense<0.000000e+00> : vector<2x128xf32>
    %207 = tpu.matmul %185, %8, %cst_63 {dimension_numbers = #tpu.dot_dimension_numbers<[1], [0], [0], [1], [0, 0, 1, 1], [], []>} : vector<2x32xf32>, vector<32x128xf32>, vector<2x128xf32> -> vector<2x128xf32>
    %208 = arith.addf %188, %207 : vector<2x128xf32>
    %209 = arith.negf %208 : vector<2x128xf32>
    %210 = math.exp %209 : vector<2x128xf32>
    %cst_64 = arith.constant 1.000000e+00 : f32
    %211 = vector.broadcast %cst_64 : f32 to vector<2x128xf32>
    %212 = arith.addf %211, %210 : vector<2x128xf32>
    %213 = arith.divf %211, %212 : vector<2x128xf32>
    %214 = math.tanh %208 : vector<2x128xf32>
    %215 = vector.extract_strided_slice %213 {offsets = [0, 0], sizes = [2, 32], strides = [1, 1]} : vector<2x128xf32> to vector<2x32xf32>
    %216 = vector.extract_strided_slice %213 {offsets = [0, 32], sizes = [2, 32], strides = [1, 1]} : vector<2x128xf32> to vector<2x32xf32>
    %217 = vector.extract_strided_slice %213 {offsets = [0, 96], sizes = [2, 32], strides = [1, 1]} : vector<2x128xf32> to vector<2x32xf32>
    %218 = vector.extract_strided_slice %214 {offsets = [0, 64], sizes = [2, 32], strides = [1, 1]} : vector<2x128xf32> to vector<2x32xf32>
    %219 = arith.mulf %216, %183 : vector<2x32xf32>
    %220 = arith.mulf %215, %218 : vector<2x32xf32>
    %221 = arith.addf %219, %220 : vector<2x32xf32>
    %222 = math.tanh %221 : vector<2x32xf32>
    %223 = arith.mulf %217, %222 : vector<2x32xf32>
    %c8_65 = arith.constant 8 : index
    %c0_66 = arith.constant 0 : index
    %224 = vector.load %arg19[%c8_65, %c0_66] : memref<16x32xf32, #tpu.memory_space<vmem>>, vector<2x32xf32>
    tpu.vector_store %arg19[%c8_65, %c0_66], %223 {strides = array<i32>} : memref<16x32xf32, #tpu.memory_space<vmem>>, vector<2x32xf32>,
    %cst_67 = arith.constant dense<0.000000e+00> : vector<2x128xf32>
    %225 = tpu.matmul %206, %9, %cst_67 {dimension_numbers = #tpu.dot_dimension_numbers<[1], [0], [0], [1], [0, 0, 1, 1], [], []>} : vector<2x32xf32>, vector<32x128xf32>, vector<2x128xf32> -> vector<2x128xf32>
    %226 = arith.addf %225, %12 : vector<2x128xf32>
    %c12 = arith.constant 12 : index
    %c0_68 = arith.constant 0 : index
    %227 = vector.load %arg18[%c12, %c0_68] : memref<16x128xf32, #tpu.memory_space<vmem>>, vector<2x128xf32>
    %cst_69 = arith.constant dense<0.000000e+00> : vector<2x128xf32>
    %228 = tpu.matmul %206, %7, %cst_69 {dimension_numbers = #tpu.dot_dimension_numbers<[1], [0], [0], [1], [0, 0, 1, 1], [], []>} : vector<2x32xf32>, vector<32x128xf32>, vector<2x128xf32> -> vector<2x128xf32>
    %229 = arith.addf %227, %228 : vector<2x128xf32>
    %230 = arith.negf %229 : vector<2x128xf32>
    %231 = math.exp %230 : vector<2x128xf32>
    %cst_70 = arith.constant 1.000000e+00 : f32
    %232 = vector.broadcast %cst_70 : f32 to vector<2x128xf32>
    %233 = arith.addf %232, %231 : vector<2x128xf32>
    %234 = arith.divf %232, %233 : vector<2x128xf32>
    %235 = math.tanh %229 : vector<2x128xf32>
    %236 = vector.extract_strided_slice %234 {offsets = [0, 0], sizes = [2, 32], strides = [1, 1]} : vector<2x128xf32> to vector<2x32xf32>
    %237 = vector.extract_strided_slice %234 {offsets = [0, 32], sizes = [2, 32], strides = [1, 1]} : vector<2x128xf32> to vector<2x32xf32>
    %238 = vector.extract_strided_slice %234 {offsets = [0, 96], sizes = [2, 32], strides = [1, 1]} : vector<2x128xf32> to vector<2x32xf32>
    %239 = vector.extract_strided_slice %235 {offsets = [0, 64], sizes = [2, 32], strides = [1, 1]} : vector<2x128xf32> to vector<2x32xf32>
    %240 = arith.mulf %237, %204 : vector<2x32xf32>
    %241 = arith.mulf %236, %239 : vector<2x32xf32>
    %242 = arith.addf %240, %241 : vector<2x32xf32>
    %243 = math.tanh %242 : vector<2x32xf32>
    %244 = arith.mulf %238, %243 : vector<2x32xf32>
    %cst_71 = arith.constant dense<0.000000e+00> : vector<2x128xf32>
    %245 = tpu.matmul %223, %8, %cst_71 {dimension_numbers = #tpu.dot_dimension_numbers<[1], [0], [0], [1], [0, 0, 1, 1], [], []>} : vector<2x32xf32>, vector<32x128xf32>, vector<2x128xf32> -> vector<2x128xf32>
    %246 = arith.addf %226, %245 : vector<2x128xf32>
    %247 = arith.negf %246 : vector<2x128xf32>
    %248 = math.exp %247 : vector<2x128xf32>
    %cst_72 = arith.constant 1.000000e+00 : f32
    %249 = vector.broadcast %cst_72 : f32 to vector<2x128xf32>
    %250 = arith.addf %249, %248 : vector<2x128xf32>
    %251 = arith.divf %249, %250 : vector<2x128xf32>
    %252 = math.tanh %246 : vector<2x128xf32>
    %253 = vector.extract_strided_slice %251 {offsets = [0, 0], sizes = [2, 32], strides = [1, 1]} : vector<2x128xf32> to vector<2x32xf32>
    %254 = vector.extract_strided_slice %251 {offsets = [0, 32], sizes = [2, 32], strides = [1, 1]} : vector<2x128xf32> to vector<2x32xf32>
    %255 = vector.extract_strided_slice %251 {offsets = [0, 96], sizes = [2, 32], strides = [1, 1]} : vector<2x128xf32> to vector<2x32xf32>
    %256 = vector.extract_strided_slice %252 {offsets = [0, 64], sizes = [2, 32], strides = [1, 1]} : vector<2x128xf32> to vector<2x32xf32>
    %257 = arith.mulf %254, %221 : vector<2x32xf32>
    %258 = arith.mulf %253, %256 : vector<2x32xf32>
    %259 = arith.addf %257, %258 : vector<2x32xf32>
    %260 = math.tanh %259 : vector<2x32xf32>
    %261 = arith.mulf %255, %260 : vector<2x32xf32>
    %c10_73 = arith.constant 10 : index
    %c0_74 = arith.constant 0 : index
    %262 = vector.load %arg19[%c10_73, %c0_74] : memref<16x32xf32, #tpu.memory_space<vmem>>, vector<2x32xf32>
    tpu.vector_store %arg19[%c10_73, %c0_74], %261 {strides = array<i32>} : memref<16x32xf32, #tpu.memory_space<vmem>>, vector<2x32xf32>,
    %cst_75 = arith.constant dense<0.000000e+00> : vector<2x128xf32>
    %263 = tpu.matmul %244, %9, %cst_75 {dimension_numbers = #tpu.dot_dimension_numbers<[1], [0], [0], [1], [0, 0, 1, 1], [], []>} : vector<2x32xf32>, vector<32x128xf32>, vector<2x128xf32> -> vector<2x128xf32>
    %264 = arith.addf %263, %12 : vector<2x128xf32>
    %c14 = arith.constant 14 : index
    %c0_76 = arith.constant 0 : index
    %265 = vector.load %arg18[%c14, %c0_76] : memref<16x128xf32, #tpu.memory_space<vmem>>, vector<2x128xf32>
    %cst_77 = arith.constant dense<0.000000e+00> : vector<2x128xf32>
    %266 = tpu.matmul %244, %7, %cst_77 {dimension_numbers = #tpu.dot_dimension_numbers<[1], [0], [0], [1], [0, 0, 1, 1], [], []>} : vector<2x32xf32>, vector<32x128xf32>, vector<2x128xf32> -> vector<2x128xf32>
    %267 = arith.addf %265, %266 : vector<2x128xf32>
    %268 = arith.negf %267 : vector<2x128xf32>
    %269 = math.exp %268 : vector<2x128xf32>
    %cst_78 = arith.constant 1.000000e+00 : f32
    %270 = vector.broadcast %cst_78 : f32 to vector<2x128xf32>
    %271 = arith.addf %270, %269 : vector<2x128xf32>
    %272 = arith.divf %270, %271 : vector<2x128xf32>
    %273 = math.tanh %267 : vector<2x128xf32>
    %274 = vector.extract_strided_slice %272 {offsets = [0, 0], sizes = [2, 32], strides = [1, 1]} : vector<2x128xf32> to vector<2x32xf32>
    %275 = vector.extract_strided_slice %272 {offsets = [0, 32], sizes = [2, 32], strides = [1, 1]} : vector<2x128xf32> to vector<2x32xf32>
    %276 = vector.extract_strided_slice %272 {offsets = [0, 96], sizes = [2, 32], strides = [1, 1]} : vector<2x128xf32> to vector<2x32xf32>
    %277 = vector.extract_strided_slice %273 {offsets = [0, 64], sizes = [2, 32], strides = [1, 1]} : vector<2x128xf32> to vector<2x32xf32>
    %278 = arith.mulf %275, %242 : vector<2x32xf32>
    %279 = arith.mulf %274, %277 : vector<2x32xf32>
    %280 = arith.addf %278, %279 : vector<2x32xf32>
    %281 = math.tanh %280 : vector<2x32xf32>
    %282 = arith.mulf %276, %281 : vector<2x32xf32>
    %cst_79 = arith.constant dense<0.000000e+00> : vector<2x128xf32>
    %283 = tpu.matmul %261, %8, %cst_79 {dimension_numbers = #tpu.dot_dimension_numbers<[1], [0], [0], [1], [0, 0, 1, 1], [], []>} : vector<2x32xf32>, vector<32x128xf32>, vector<2x128xf32> -> vector<2x128xf32>
    %284 = arith.addf %264, %283 : vector<2x128xf32>
    %285 = arith.negf %284 : vector<2x128xf32>
    %286 = math.exp %285 : vector<2x128xf32>
    %cst_80 = arith.constant 1.000000e+00 : f32
    %287 = vector.broadcast %cst_80 : f32 to vector<2x128xf32>
    %288 = arith.addf %287, %286 : vector<2x128xf32>
    %289 = arith.divf %287, %288 : vector<2x128xf32>
    %290 = math.tanh %284 : vector<2x128xf32>
    %291 = vector.extract_strided_slice %289 {offsets = [0, 0], sizes = [2, 32], strides = [1, 1]} : vector<2x128xf32> to vector<2x32xf32>
    %292 = vector.extract_strided_slice %289 {offsets = [0, 32], sizes = [2, 32], strides = [1, 1]} : vector<2x128xf32> to vector<2x32xf32>
    %293 = vector.extract_strided_slice %289 {offsets = [0, 96], sizes = [2, 32], strides = [1, 1]} : vector<2x128xf32> to vector<2x32xf32>
    %294 = vector.extract_strided_slice %290 {offsets = [0, 64], sizes = [2, 32], strides = [1, 1]} : vector<2x128xf32> to vector<2x32xf32>
    %295 = arith.mulf %292, %259 : vector<2x32xf32>
    %296 = arith.mulf %291, %294 : vector<2x32xf32>
    %297 = arith.addf %295, %296 : vector<2x32xf32>
    %298 = math.tanh %297 : vector<2x32xf32>
    %299 = arith.mulf %293, %298 : vector<2x32xf32>
    %c12_81 = arith.constant 12 : index
    %c0_82 = arith.constant 0 : index
    %300 = vector.load %arg19[%c12_81, %c0_82] : memref<16x32xf32, #tpu.memory_space<vmem>>, vector<2x32xf32>
    tpu.vector_store %arg19[%c12_81, %c0_82], %299 {strides = array<i32>} : memref<16x32xf32, #tpu.memory_space<vmem>>, vector<2x32xf32>,
    %cst_83 = arith.constant dense<0.000000e+00> : vector<2x128xf32>
    %301 = tpu.matmul %282, %9, %cst_83 {dimension_numbers = #tpu.dot_dimension_numbers<[1], [0], [0], [1], [0, 0, 1, 1], [], []>} : vector<2x32xf32>, vector<32x128xf32>, vector<2x128xf32> -> vector<2x128xf32>
    %302 = arith.addf %301, %12 : vector<2x128xf32>
    %cst_84 = arith.constant dense<0.000000e+00> : vector<2x128xf32>
    %303 = tpu.matmul %299, %8, %cst_84 {dimension_numbers = #tpu.dot_dimension_numbers<[1], [0], [0], [1], [0, 0, 1, 1], [], []>} : vector<2x32xf32>, vector<32x128xf32>, vector<2x128xf32> -> vector<2x128xf32>
    %304 = arith.addf %302, %303 : vector<2x128xf32>
    %305 = arith.negf %304 : vector<2x128xf32>
    %306 = math.exp %305 : vector<2x128xf32>
    %cst_85 = arith.constant 1.000000e+00 : f32
    %307 = vector.broadcast %cst_85 : f32 to vector<2x128xf32>
    %308 = arith.addf %307, %306 : vector<2x128xf32>
    %309 = arith.divf %307, %308 : vector<2x128xf32>
    %310 = math.tanh %304 : vector<2x128xf32>
    %311 = vector.extract_strided_slice %309 {offsets = [0, 0], sizes = [2, 32], strides = [1, 1]} : vector<2x128xf32> to vector<2x32xf32>
    %312 = vector.extract_strided_slice %309 {offsets = [0, 32], sizes = [2, 32], strides = [1, 1]} : vector<2x128xf32> to vector<2x32xf32>
    %313 = vector.extract_strided_slice %309 {offsets = [0, 96], sizes = [2, 32], strides = [1, 1]} : vector<2x128xf32> to vector<2x32xf32>
    %314 = vector.extract_strided_slice %310 {offsets = [0, 64], sizes = [2, 32], strides = [1, 1]} : vector<2x128xf32> to vector<2x32xf32>
    %315 = arith.mulf %312, %297 : vector<2x32xf32>
    %316 = arith.mulf %311, %314 : vector<2x32xf32>
    %317 = arith.addf %315, %316 : vector<2x32xf32>
    %318 = math.tanh %317 : vector<2x32xf32>
    %319 = arith.mulf %313, %318 : vector<2x32xf32>
    %c14_86 = arith.constant 14 : index
    %c0_87 = arith.constant 0 : index
    %320 = vector.load %arg19[%c14_86, %c0_87] : memref<16x32xf32, #tpu.memory_space<vmem>>, vector<2x32xf32>
    tpu.vector_store %arg19[%c14_86, %c0_87], %319 {strides = array<i32>} : memref<16x32xf32, #tpu.memory_space<vmem>>, vector<2x32xf32>,
    %c0_88 = arith.constant 0 : index
    %c0_89 = arith.constant 0 : index
    %321 = vector.load %arg19[%c0_88, %c0_89] : memref<16x32xf32, #tpu.memory_space<vmem>>, vector<16x32xf32>
    %c0_90 = arith.constant 0 : index
    %c0_91 = arith.constant 0 : index
    %322 = vector.load %arg11[%c0_90, %c0_91] : memref<32x32xf32, #tpu.memory_space<vmem>>, vector<32x32xf32>
    %cst_92 = arith.constant dense<0.000000e+00> : vector<16x32xf32>
    %323 = tpu.matmul %321, %322, %cst_92 {dimension_numbers = #tpu.dot_dimension_numbers<[1], [0], [0], [1], [0, 0, 1, 1], [], []>} : vector<16x32xf32>, vector<32x32xf32>, vector<16x32xf32> -> vector<16x32xf32>
    %c0_93 = arith.constant 0 : index
    %c0_94 = arith.constant 0 : index
    %324 = vector.load %arg12[%c0_93, %c0_94] : memref<1x32xf32, #tpu.memory_space<vmem>>, vector<1x32xf32>
    %325 = vector.broadcast %324 : vector<1x32xf32> to vector<16x32xf32>
    %326 = arith.addf %323, %325 : vector<16x32xf32>
    %327 = math.tanh %326 : vector<16x32xf32>
    %c0_95 = arith.constant 0 : index
    %c0_96 = arith.constant 0 : index
    %328 = vector.load %arg13[%c0_95, %c0_96] : memref<32x1xf32, #tpu.memory_space<vmem>>, vector<32x1xf32>
    %cst_97 = arith.constant dense<0.000000e+00> : vector<16x1xf32>
    %329 = tpu.matmul %327, %328, %cst_97 {dimension_numbers = #tpu.dot_dimension_numbers<[1], [0], [0], [1], [0, 0, 1, 1], [], []>} : vector<16x32xf32>, vector<32x1xf32>, vector<16x1xf32> -> vector<16x1xf32>
    %c0_98 = arith.constant 0 : index
    %c0_99 = arith.constant 0 : index
    %330 = vector.load %arg14[%c0_98, %c0_99] : memref<1x1xf32, #tpu.memory_space<vmem>>, vector<1x1xf32>
    %331 = vector.broadcast %330 : vector<1x1xf32> to vector<16x1xf32>
    %332 = arith.addf %329, %331 : vector<16x1xf32>
    %c0_100 = arith.constant 0 : index
    %c0_101 = arith.constant 0 : index
    %333 = vector.load %arg15[%c0_100, %c0_101] : memref<8x16xf32, #tpu.memory_space<vmem>>, vector<8x16xf32>
    %cst_102 = arith.constant dense<0.000000e+00> : vector<8x1xf32>
    %334 = tpu.matmul %333, %332, %cst_102 {dimension_numbers = #tpu.dot_dimension_numbers<[1], [0], [0], [1], [0, 0, 1, 1], [], []>} : vector<8x16xf32>, vector<16x1xf32>, vector<8x1xf32> -> vector<8x1xf32>
    %c0_103 = arith.constant 0 : index
    %c0_104 = arith.constant 0 : index
    %335 = vector.load %arg16[%c0_103, %c0_104] : memref<8x1xf32, #tpu.memory_space<vmem>>, vector<8x1xf32>
    %336 = arith.addf %334, %335 : vector<8x1xf32>
    %c0_105 = arith.constant 0 : index
    %c0_106 = arith.constant 0 : index
    %337 = vector.load %arg17[%c0_105, %c0_106] : memref<8x1xf32, #tpu.memory_space<vmem>>, vector<8x1xf32>
    tpu.vector_store %arg17[%c0_105, %c0_106], %336 {strides = array<i32>} : memref<8x1xf32, #tpu.memory_space<vmem>>, vector<8x1xf32>,
    return
  }
}

</mosaic_0001>

<bundles_post_ra>
// kernel: tpu_custom_call.1
= control target key start
LH: loop header
LB: loop body
LE: loop exit
PB: predicated region body
PF: predicated region fallthrough
CT: control target
= control target key end

     0   :  { %s4339_s0 = inlined_call_operand.hbm [shape: f32[16,12], index: 0, kind: input, shape index: {}]   ;;  %s4340_s1 = inlined_call_operand.hbm [shape: f32[2,32], index: 1, kind: input, shape index: {}]   ;;  %s4341_s2 = inlined_call_operand.hbm [shape: f32[2,32], index: 2, kind: input, shape index: {}]   ;;  %s4342_s3 = inlined_call_operand.hbm [shape: f32[2,32], index: 3, kind: input, shape index: {}]   ;;  %s4343_s4 = inlined_call_operand.hbm [shape: f32[2,32], index: 4, kind: input, shape index: {}]   ;;  %s4344_s5 = inlined_call_operand.hbm [shape: f32[12,128], index: 5, kind: input, shape index: {}]   ;;  %s4345_s6 = inlined_call_operand.vmem [shape: f32[32,128], index: 6, kind: input, shape index: {}]   ;;  %s4346_s7 = inlined_call_operand.hbm [shape: f32[1,128], index: 7, kind: input, shape index: {}]   ;;  %s4347_s8 = inlined_call_operand.hbm [shape: f32[32,128], index: 8, kind: input, shape index: {}]   ;;  %s4348_s9 = inlined_call_operand.hbm [shape: f32[32,128], index: 9, kind: input, shape index: {}]   ;;  %s4349_s10 = inlined_call_operand.hbm [shape: f32[1,128], index: 10, kind: input, shape index: {}]   ;;  %s4350_s11 = inlined_call_operand.vmem [shape: f32[32,32], index: 11, kind: input, shape index: {}]   ;;  %s4351_s12 = inlined_call_operand.hbm [shape: f32[1,32], index: 12, kind: input, shape index: {}]   ;;  %s4352_s13 = inlined_call_operand.vmem [shape: f32[32,1], index: 13, kind: input, shape index: {}]   ;;  %s4353_s14 = inlined_call_operand.<no memory space> [shape: f32[1,1], index: 14, kind: input, shape index: {}]   ;;  %s4354_s15 = inlined_call_operand.hbm [shape: f32[8,16], index: 15, kind: input, shape index: {}]   ;;  %s4355_s16 = inlined_call_operand.vmem [shape: f32[8,1], index: 16, kind: input, shape index: {}]   ;;  %s4356_s17 = inlined_call_operand.vmem [shape: f32[8,1], index: 17, kind: output, shape index: {}]  }
   0x1   :  { %4357 = sst [smem:[#allocation31_spill]] %s4339_s0  ;;  %v22_v0 = vstv %s4353_s14 }
   0x2   :  { %4358 = sst [smem:[#allocation32_spill]] %s4340_s1  ;;  %23 = vst [vmem:[#allocation4] sm:$0x1] %v22_v0 }
   0x3   :  { %24 = vsyncpa [#allocation6], 0 }
   0x4   :  { %25 = vsyncpa [#allocation8], 0 }
   0x5   :  { %26 = vsyncpa [#allocation11], 0 }
   0x6   :  { %27 = vsyncpa [#allocation14], 0 }
   0x7   :  { %28 = vsyncpa [#allocation17], 0 }
   0x8   :  { %29 = vsyncpa [#allocation20], 0 }
   0x9   :  { %30 = vsyncpa [#allocation23], 0  ;;  %s3710_s26 = smov [#allocation7]   ;;  %s3711_s28 = smov [#allocation10]  }
   0xa   :  { %s49_s27 = sshll.u32 %s3710_s26, 4  ;;  %s69_s29 = sshll.u32 %s3711_s28, 4  ;;  %s50_s27 = int_to_ptr.vmem [resolvable:$true] %s49_s27  ;;  %s70_s29 = int_to_ptr.vmem [resolvable:$true] %s69_s29 }
   0xb   :  { %s3464_s0 = scalar_lea.vmem %s50_s27, 32  ;;  %p3469_p1 = scmp.lt.s32.totalorder %s50_s27, %s50_s27 }
   0xc   :  { %p3465_p0 = scmp.ne.s32.totalorder %s50_s27, %s3464_s0  ;;  %p3470_p2 = scmp.lt.s32.totalorder %s3464_s0, %s3464_s0 }
   0xe   :  { %p3471_p3 = por %p3470_p2, %p3469_p1 }
  0x10   :  { %p3472_p4 = pnand %p3471_p3, %p3465_p0 }
  0x12   :  { %3475 = shalt.err (!%p3472_p4)
}
  0x13   :  { %s4359_s18 = sld [smem:[#allocation32_spill]]  ;;  %s3484_s19 = scalar_lea.vmem %s70_s29, 32 }
  0x14   :  { %p3485_p5 = scmp.ne.s32.totalorder %s70_s29, %s3484_s19  ;;  %p3489_p6 = scmp.lt.s32.totalorder %s70_s29, %s70_s29 }
  0x15   :  { %p3490_p7 = scmp.lt.s32.totalorder %s3484_s19, %s3484_s19 }
  0x17   :  { %p3491_p8 = por %p3490_p7, %p3489_p6 }
  0x19   :  { %52 = dma.hbm_to_vmem [thread:$0]  %s4359_s18, 32, %s50_s27, [#allocation8]  }
  0x1a   :  { %p3492_p9 = pnand %p3491_p8, %p3485_p5 }
  0x1c   :  { %3495 = shalt.err (!%p3492_p9)
}
  0x1d   :  { %72 = dma.hbm_to_vmem [thread:$0]  %s4342_s3, 32, %s70_s29, [#allocation11]  }
  0x1e   :  { %s3712_s21 = smov [#allocation13]   ;;  %s3713_s23 = smov [#allocation16]  }
  0x1f   :  { %s88_s22 = sshll.u32 %s3712_s21, 4  ;;  %s112_s24 = sshll.u32 %s3713_s23, 4  ;;  %s89_s22 = int_to_ptr.vmem [resolvable:$true] %s88_s22  ;;  %s113_s24 = int_to_ptr.vmem [resolvable:$true] %s112_s24 }
  0x20   :  { %s3504_s25 = scalar_lea.vmem %s89_s22, 256  ;;  %p3509_p11 = scmp.lt.s32.totalorder %s89_s22, %s89_s22 }
  0x21   :  { %p3505_p10 = scmp.ne.s32.totalorder %s89_s22, %s3504_s25  ;;  %p3510_p12 = scmp.lt.s32.totalorder %s3504_s25, %s3504_s25 }
  0x23   :  { %p3511_p13 = por %p3510_p12, %p3509_p11 }
  0x25   :  { %p3512_p0 = pnand %p3511_p13, %p3505_p10 }
  0x27   :  { %3515 = shalt.err (!%p3512_p0)
}
  0x28   :  { %s3714_s26 = smov 128   ;;  %s3715_s27 = smov 8  }
  0x29   :  { %94 = dma.hbm_to_vmem [thread:$0]  %s4344_s5, 256, %s89_s22, [#allocation14], %s3714_s26, %s3714_s26, %s3715_s27  }
  0x2a   :  { %s3524_s29 = scalar_lea.vmem %s113_s24, 512  ;;  %p3529_p2 = scmp.lt.s32.totalorder %s113_s24, %s113_s24 }
  0x2b   :  { %p3525_p1 = scmp.ne.s32.totalorder %s113_s24, %s3524_s29  ;;  %p3530_p3 = scmp.lt.s32.totalorder %s3524_s29, %s3524_s29 }
  0x2d   :  { %p3531_p4 = por %p3530_p3, %p3529_p2 }
  0x2f   :  { %p3532_p5 = pnand %p3531_p4, %p3525_p1 }
  0x31   :  { %3535 = shalt.err (!%p3532_p5)
}
  0x32   :  { %118 = dma.hbm_to_vmem [thread:$0]  %s4347_s8, 512, %s113_s24, [#allocation17], %s3714_s26, %s3714_s26, %s3715_s27  }
  0x33   :  { %s3716_s30 = smov [#allocation19]   ;;  %s3717_s19 = smov [#allocation5]  }
  0x34   :  { %s137_s18 = sshll.u32 %s3716_s30, 4  ;;  %s36_s1 = sshll.u32 %s3717_s19, 4  ;;  %s138_s18 = int_to_ptr.vmem [resolvable:$true] %s137_s18  ;;  %s37_s1 = int_to_ptr.vmem [resolvable:$true] %s36_s1 }
  0x35   :  { %s3544_s5 = scalar_lea.vmem %s138_s18, 16  ;;  %s3548_s20 = scalar_lea.vmem %s138_s18, 32 }
  0x36   :  { %p3545_p6 = scmp.ne.s32.totalorder %s138_s18, %s3544_s5  ;;  %p3549_p7 = scmp.lt.s32.totalorder %s138_s18, %s138_s18 }
  0x37   :  { %p3550_p8 = scmp.lt.s32.totalorder %s3548_s20, %s3544_s5 }
  0x39   :  { %p3551_p9 = por %p3550_p8, %p3549_p7 }
  0x3b   :  { %p3552_p10 = pnand %p3551_p9, %p3545_p6 }
  0x3d   :  { %3555 = shalt.err (!%p3552_p10)
}
  0x3e   :  { %140 = dma.hbm_to_vmem [thread:$0]  %s4349_s10, 16, %s138_s18, [#allocation20]  }
  0x3f   :  { %s3564_s23 = scalar_lea.vmem %s37_s1, 256  ;;  %p3569_p12 = scmp.lt.s32.totalorder %s37_s1, %s37_s1 }
  0x40   :  { %p3565_p11 = scmp.ne.s32.totalorder %s37_s1, %s3564_s23  ;;  %p3570_p13 = scmp.lt.s32.totalorder %s3564_s23, %s3564_s23 }
  0x42   :  { %p3571_p0 = por %p3570_p13, %p3569_p12 }
  0x44   :  { %p3572_p1 = pnand %p3571_p0, %p3565_p11 }
  0x46   :  { %3575 = shalt.err (!%p3572_p1)
}
  0x47   :  { %s4360_s25 = sld [smem:[#allocation31_spill]]  ;;  %s3718_s28 = smov [#allocation9]  }
  0x48   :  { %s59_s3 = sshll.u32 %s3718_s28, 4  ;;  %s3719_s29 = smov [#allocation12]   ;;  %s60_s3 = int_to_ptr.vmem [resolvable:$true] %s59_s3 }
  0x49   :  { %s79_s0 = sshll.u32 %s3719_s29, 4  ;;  %s3584_s10 = scalar_lea.vmem %s60_s3, 32  ;;  %s80_s0 = int_to_ptr.vmem [resolvable:$true] %s79_s0 }
  0x4a   :  { %p3585_p2 = scmp.ne.s32.totalorder %s60_s3, %s3584_s10  ;;  %p3589_p3 = scmp.lt.s32.totalorder %s60_s3, %s60_s3 }
  0x4b   :  { %p3590_p4 = scmp.lt.s32.totalorder %s3584_s10, %s3584_s10 }
  0x4d   :  { %42 = dma.hbm_to_vmem [thread:$0]  %s4360_s25, 256, %s37_s1, [#allocation6], %s3714_s26, %s3714_s26, %s3715_s27  }
  0x4e   :  { %p3591_p5 = por %p3590_p4, %p3589_p3 }
  0x50   :  { %p3592_p6 = pnand %p3591_p5, %p3585_p2 }
  0x52   :  { %3595 = shalt.err (!%p3592_p6)
}
  0x53   :  { %62 = dma.hbm_to_vmem [thread:$0]  %s4341_s2, 32, %s60_s3, [#allocation8]  }
  0x54   :  { %s3604_s18 = scalar_lea.vmem %s80_s0, 32  ;;  %p3609_p8 = scmp.lt.s32.totalorder %s80_s0, %s80_s0 }
  0x55   :  { %p3605_p7 = scmp.ne.s32.totalorder %s80_s0, %s3604_s18  ;;  %p3610_p9 = scmp.lt.s32.totalorder %s3604_s18, %s3604_s18 }
  0x57   :  { %p3611_p10 = por %p3610_p9, %p3609_p8 }
  0x59   :  { %p3612_p11 = pnand %p3611_p10, %p3605_p7 }
  0x5b   :  { %3615 = shalt.err (!%p3612_p11)
}
  0x5c   :  { %82 = dma.hbm_to_vmem [thread:$0]  %s4343_s4, 32, %s80_s0, [#allocation11]  }
  0x5d   :  { %s3720_s5 = smov [#allocation15]   ;;  %s3721_s21 = smov [#allocation18]  }
  0x5e   :  { %s103_s20 = sshll.u32 %s3720_s5, 4  ;;  %s124_s22 = sshll.u32 %s3721_s21, 4  ;;  %s104_s20 = int_to_ptr.vmem [resolvable:$true] %s103_s20  ;;  %s125_s22 = int_to_ptr.vmem [resolvable:$true] %s124_s22 }
  0x5f   :  { %s3624_s23 = scalar_lea.vmem %s104_s20, 16  ;;  %s3628_s2 = scalar_lea.vmem %s104_s20, 32 }
  0x60   :  { %p3625_p12 = scmp.ne.s32.totalorder %s104_s20, %s3624_s23  ;;  %p3629_p13 = scmp.lt.s32.totalorder %s104_s20, %s104_s20 }
  0x61   :  { %p3630_p0 = scmp.lt.s32.totalorder %s3628_s2, %s3624_s23 }
  0x63   :  { %p3631_p1 = por %p3630_p0, %p3629_p13 }
  0x65   :  { %p3632_p2 = pnand %p3631_p1, %p3625_p12 }
  0x67   :  { %3635 = shalt.err (!%p3632_p2)
}
  0x68   :  { %106 = dma.hbm_to_vmem [thread:$0]  %s4346_s7, 16, %s104_s20, [#allocation14]  }
  0x69   :  { %s3644_s25 = scalar_lea.vmem %s125_s22, 512  ;;  %p3649_p4 = scmp.lt.s32.totalorder %s125_s22, %s125_s22 }
  0x6a   :  { %p3645_p3 = scmp.ne.s32.totalorder %s125_s22, %s3644_s25  ;;  %p3650_p5 = scmp.lt.s32.totalorder %s3644_s25, %s3644_s25 }
  0x6c   :  { %p3651_p6 = por %p3650_p5, %p3649_p4 }
  0x6e   :  { %p3652_p7 = pnand %p3651_p6, %p3645_p3 }
  0x70   :  { %3655 = shalt.err (!%p3652_p7)
}
  0x71   :  { %130 = dma.hbm_to_vmem [thread:$0]  %s4348_s9, 512, %s125_s22, [#allocation17], %s3714_s26, %s3714_s26, %s3715_s27  }
  0x72   :  { %s3722_s3 = smov [#allocation21]   ;;  %s3723_s0 = smov [#allocation22]  }
  0x73   :  { %s149_s29 = sshll.u32 %s3722_s3, 4  ;;  %s163_s10 = sshll.u32 %s3723_s0, 4  ;;  %s150_s29 = int_to_ptr.vmem [resolvable:$true] %s149_s29  ;;  %s164_s10 = int_to_ptr.vmem [resolvable:$true] %s163_s10 }
  0x74   :  { %s3664_s7 = scalar_lea.vmem %s150_s29, 16  ;;  %s3668_s14 = scalar_lea.vmem %s150_s29, 32 }
  0x75   :  { %p3665_p8 = scmp.ne.s32.totalorder %s150_s29, %s3664_s7  ;;  %p3669_p9 = scmp.lt.s32.totalorder %s150_s29, %s150_s29 }
  0x76   :  { %p3670_p10 = scmp.lt.s32.totalorder %s3668_s14, %s3664_s7 }
  0x78   :  { %p3671_p11 = por %p3670_p10, %p3669_p9 }
  0x7a   :  { %p3672_p12 = pnand %p3671_p11, %p3665_p8 }
  0x7c   :  { %3675 = shalt.err (!%p3672_p12)
}
  0x7d   :  { %152 = dma.hbm_to_vmem [thread:$0]  %s4351_s12, 16, %s150_s29, [#allocation20]  }
  0x7e   :  { %s3684_s19 = scalar_lea.vmem %s164_s10, 128  ;;  %p3689_p0 = scmp.lt.s32.totalorder %s164_s10, %s164_s10 }
  0x7f   :  { %p3685_p13 = scmp.ne.s32.totalorder %s164_s10, %s3684_s19  ;;  %p3690_p1 = scmp.lt.s32.totalorder %s3684_s19, %s3684_s19 }
  0x81   :  { %p3691_p2 = por %p3690_p1, %p3689_p0 }
  0x83   :  { %p3692_p3 = pnand %p3691_p2, %p3685_p13 }
  0x85   :  { %3695 = shalt.err (!%p3692_p3)
}
  0x86   :  { %166 = dma.hbm_to_vmem [thread:$0]  %s4354_s15, 128, %s164_s10, [#allocation23]  }
  0x87   :  { %3696 = dma.done.wait [#allocation6], 256  }
  0x88   :  { %3697 = vsyncadd [#allocation6], 4294967040 }
  0x89   :  { %3698 = dma.done.wait [#allocation8], 64  }
  0x8a   :  { %3699 = vsyncadd [#allocation8], 4294967232 }
  0x8b   :  { %3700 = dma.done.wait [#allocation11], 64  }
  0x8c   :  { %3701 = vsyncadd [#allocation11], 4294967232 }
  0x8d   :  { %3702 = dma.done.wait [#allocation14], 272  }
  0x8e   :  { %3703 = vsyncadd [#allocation14], 4294967024 }
  0x8f   :  { %3704 = dma.done.wait [#allocation17], 1024  }
  0x90   :  { %3705 = vsyncadd [#allocation17], 4294966272 }
  0x91   :  { %3706 = dma.done.wait [#allocation20], 32  }
  0x92   :  { %3707 = vsyncadd [#allocation20], 4294967264 }
  0x93   :  { %3708 = dma.done.wait [#allocation23], 128  }
  0x94   :  { %3709 = vsyncadd [#allocation23], 4294967168  ;;  %v3724_v1 = vmov 0.0   ;;  %vm3725_vm0 = vmmov 0   ;;  %vm223_vm1 = vcmask 1043456   ;;  %vm216_vm2 = vcmask 97280  }
  0x95   :  { %3000 = vmatprep.subr.mxu1 %v3724_v1  ;;  %3008 = vmatprep.mubr.msk.f32.mxu1 %vm3725_vm0, %v3724_v1  ;;  %v208_v2 = vld [vmem:[#allocation13 + $0x8] sm:$0xf]  ;;  %v207_v3 = vld [vmem:[#allocation13] sm:$0xff]  ;;  %v3881_v6 = vld [vmem:[%s4345_s6 + $0x10] sm:$0xff]  ;;  %vm325_vm3 = vcmask 261120   ;;  %s3726_s23 = smov 64  }
  0x96   :  { %v205_v4 = vld [vmem:[#allocation5] sm:$0xff]  ;;  %2993 = vmatprep.subr.msk.mxu0 %vm223_vm1, %v208_v2  ;;  %v3876_v5 = vld [vmem:[%s4345_s6 + $0x18] sm:$0xff]  ;;  %v206_v7 = vld [vmem:[#allocation5 + $0x8] sm:$0xff]  ;;  %s3727_s2 = smov 32   ;;  %vm708_vm4 = vcmask 254976   ;;  %vm2715_vm5 = vcmask 130048  }
  0x97   :  { %2997 = vmatprep.mubr.msk.f32.mxu0 %vm216_vm2, %v205_v4  ;;  %2994 = vmatpush3.msk.msra.mxu0 %vm223_vm1, %v208_v2  ;;  %v3888_v8 = vld [vmem:[%s4345_s6 + $0x8] sm:$0xff]  ;;  %v3896_v9 = vld [vmem:[%s4345_s6] sm:$0xff]  ;;  %v324_v10 = vld [vmem:[#allocation7] sm:$0x3]  ;;  %vm2789_vm6 = vcmask 7168  }
  0x98   :  { %3001 = vmatpush3.msra.mxu1 %v3876_v5  ;;  %2995 = vmatprep.subr.mxu0 %v207_v3  ;;  %v2802_v11 = vld [vmem:[#allocation15] ss:$0 sm:$0xff]  ;;  %v400_v21 = vld [vmem:[#allocation9] sm:$0x3]  ;;  %v3924_v33 = vld [vmem:[#allocation16 + $0x10] sm:$0xff] }
  0x99   :  { %3002 = vmatprep.subr.mxu1 %v3724_v1  ;;  %2996 = vmatpush3.msra.mxu0 %v207_v3  ;;  %v3922_v32 = vld [vmem:[#allocation16 + $0x18] sm:$0xff]  ;;  %v3928_v34 = vld [vmem:[#allocation16 + $0x8] sm:$0xff]  ;;  %v3932_v35 = vld [vmem:[#allocation16] sm:$0xff] }
  0x9a   :  { %3003 = vmatpush3.msra.mxu1 %v3881_v6  ;;  %2998 = vmatmul.mubr.msk.f32.vlgmr.msra.gmra.mxu0 %vm216_vm2, %v206_v7  ;;  %v3940_v39 = vld [vmem:[#allocation18 + $0x18] sm:$0xff]  ;;  %v3944_v41 = vld [vmem:[#allocation18 + $0x10] sm:$0xff]  ;;  %v3950_v42 = vld [vmem:[#allocation18 + $0x8] sm:$0xff] }
  0x9b   :  { %3004 = vmatprep.subr.mxu1 %v3724_v1  ;;  %3011 = vmatprep.subr.mxu0 %v3724_v1  ;;  %v3956_v43 = vld [vmem:[#allocation18] sm:$0xff]  ;;  %v504_v44 = vld [vmem:[#allocation10] sm:$0x3]  ;;  %v505_v58 = vld [vmem:[#allocation12] sm:$0x3] }
  0x9c   :  { %3005 = vmatpush3.msra.mxu1 %v3888_v8  ;;  %3019 = vmatprep.mubr.msk.f32.mxu0 %vm3725_vm0, %v3724_v1  ;;  %v3981_v51 = vld [vmem:[#allocation19] ss:$0 sm:$0xff] }
  0x9d   :  { %3006 = vmatprep.subr.mxu1 %v3724_v1  ;;  %3012 = vmatpush3.msra.mxu0 %v3922_v32 }
  0x9e   :  { %3007 = vmatpush3.msra.mxu1 %v3896_v9  ;;  %3013 = vmatprep.subr.mxu0 %v3724_v1 }
  0x9f   :  { %3009 = vmatmul.mubr.msk.f32.vlgmr.msra.gmra.mxu1 %vm325_vm3, %v324_v10  ;;  %3022 = vmatprep.subr.mxu1 %v3724_v1 }
  0xa0   :  { %3023 = vmatpush3.msra.mxu1 %v3876_v5  ;;  %3030 = vmatprep.mubr.msk.f32.mxu1 %vm3725_vm0, %v3724_v1 }
  0xa1   :  { %3024 = vmatprep.subr.mxu1 %v3724_v1  ;;  %3014 = vmatpush3.msra.mxu0 %v3924_v33 }
  0xa2   :  { %3025 = vmatpush3.msra.mxu1 %v3881_v6  ;;  %3015 = vmatprep.subr.mxu0 %v3724_v1 }
  0xa3   :  { %3026 = vmatprep.subr.mxu1 %v3724_v1  ;;  %3016 = vmatpush3.msra.mxu0 %v3928_v34 }
  0xa4   :  { %3027 = vmatpush3.msra.mxu1 %v3888_v8  ;;  %3017 = vmatprep.subr.mxu0 %v3724_v1 }
  0xa5   :  { %3028 = vmatprep.subr.mxu1 %v3724_v1  ;;  %3018 = vmatpush3.msra.mxu0 %v3932_v35 }
  0xa6   :  { %3029 = vmatpush3.msra.mxu1 %v3896_v9  ;;  %3033 = vmatprep.subr.mxu0 %v3724_v1 }
  0xa7   :  { %3044 = vmatprep.subr.mxu1 %v3724_v1 }
 0x15a   :  { %v2999_v12 = vpop.f32.mrf.mxu0 }
 0x15b   :  { %v299_v13 = vadd.f32 %v2999_v12, %v2802_v11 }
 0x15c   :  { %v293_v14 = vpop.f32.mrf.mxu0 }
 0x15d   :  { %303 = vst [vmem:[#allocation2 + $0x8] sm:$0xff] %v299_v13  ;;  %v294_v15 = vadd.f32 %v2802_v11, %v293_v14 }
 0x15f   :  { %v395_v16 = vpop.f32.mrf.mxu1  ;;  %302 = vst [vmem:[#allocation2] sm:$0xff] %v294_v15 }
 0x161   :  { %v3010_v17 = vpop.f32.mrf.mxu1 }
 0x166   :  { %v323_v18 = vld [vmem:[#allocation2] sm:$0x3]  ;;  %v506_v46 = vld [vmem:[#allocation2 + $0x2] sm:$0x3] }
 0x167   :  { %v399_v19 = vadd.f32 %v395_v16, %v323_v18 }
 0x169   :  { %3311 = vtanh.f32 %v399_v19  ;;  %v2808_v22 = vmul.f32 -1.442695, %v399_v19 }
 0x16b   :  { %3313 = vpow2.f32 %v2808_v22 }
 0x176   :  { %v3312_v20 = vpop.eup %3311 }
 0x177   :  { %414 = vrot.lane.b32.xlu0 %v3312_v20, %s3726_s23 }
 0x178   :  { %v3314_v23 = vpop.eup %3313 }
 0x179   :  { %v404_v24 = vadd.f32 1.0, %v3314_v23 }
 0x17b   :  { %409 = vrot.lane.b32.xlu0 %v400_v21, %s3727_s2  ;;  %3315 = vrcp.f32 %v404_v24 }
 0x188   :  { %v3316_v25 = vpop.eup %3315 }
 0x1e9   :  { %v415_v26 = vpop.permute.xlu0 %414 }
 0x1ea   :  { %v417_v27 = vmul.f32 %v3316_v25, %v415_v26 }
 0x1ec   :  { %419 = vrot.lane.b32.xlu1 %v417_v27, %s3727_s2 }
 0x1ed   :  { %v410_v28 = vpop.permute.xlu0 %409 }
 0x1ee   :  { %v412_v29 = vmul.f32 %v3316_v25, %v410_v28  ;;  %v785_v28 = vld [vmem:[#allocation2 + $0x4] sm:$0x3] }
 0x25e   :  { %v420_v30 = vpop.permute.xlu1 %419 }
 0x25f   :  { %v3919_v31 = vadd.f32 %v420_v30, %v412_v29 }
 0x261   :  { %3317 = vtanh.f32 %v3919_v31 }
 0x26e   :  { %v3318_v36 = vpop.eup %3317 }
 0x26f   :  { %425 = vrot.lane.b32.xlu1 %v3318_v36, %s3726_s23 }
 0x2e1   :  { %v426_v37 = vpop.permute.xlu1 %425 }
 0x2e2   :  { %v428_v38 = vmul.f32 %v3316_v25, %v426_v37 }
 0x2e4   :  { %430 = vrot.lane.b32.xlu0 %v428_v38, %s3727_s2 }
 0x356   :  { %v431_v40 = vpop.permute.xlu0 %430 }
 0x357   :  { %3020 = vmatmul.mubr.msk.f32.vlgmr.msra.gmra.mxu0 %vm325_vm3, %v431_v40  ;;  %3031 = vmatmul.mubr.msk.f32.vlgmr.msra.gmra.mxu1 %vm325_vm3, %v431_v40 }
 0x358   :  { %3034 = vmatpush3.msra.mxu0 %v3940_v39  ;;  %3041 = vmatprep.mubr.msk.f32.mxu0 %vm3725_vm0, %v3724_v1 }
 0x359   :  { %3035 = vmatprep.subr.mxu0 %v3724_v1  ;;  %3045 = vmatpush3.msra.mxu1 %v3922_v32 }
 0x35a   :  { %3036 = vmatpush3.msra.mxu0 %v3944_v41  ;;  %3046 = vmatprep.subr.mxu1 %v3724_v1 }
 0x35b   :  { %3037 = vmatprep.subr.mxu0 %v3724_v1  ;;  %3047 = vmatpush3.msra.mxu1 %v3924_v33 }
 0x35c   :  { %3038 = vmatpush3.msra.mxu0 %v3950_v42  ;;  %3048 = vmatprep.subr.mxu1 %v3724_v1 }
 0x35d   :  { %3039 = vmatprep.subr.mxu0 %v3724_v1  ;;  %3049 = vmatpush3.msra.mxu1 %v3928_v34 }
 0x35e   :  { %3040 = vmatpush3.msra.mxu0 %v3956_v43  ;;  %3050 = vmatprep.subr.mxu1 %v3724_v1 }
 0x35f   :  { %3042 = vmatmul.mubr.msk.f32.vlgmr.msra.gmra.mxu0 %vm325_vm3, %v504_v44  ;;  %3055 = vmatprep.subr.mxu0 %v3724_v1 }
 0x360   :  { %3056 = vmatpush3.msra.mxu0 %v3876_v5  ;;  %3051 = vmatpush3.msra.mxu1 %v3932_v35 }
 0x361   :  { %3057 = vmatprep.subr.mxu0 %v3724_v1  ;;  %3052 = vmatprep.mubr.msk.f32.mxu1 %vm3725_vm0, %v3724_v1 }
 0x362   :  { %3058 = vmatpush3.msra.mxu0 %v3881_v6  ;;  %3063 = vmatprep.mubr.msk.f32.mxu0 %vm3725_vm0, %v3724_v1 }
 0x363   :  { %3059 = vmatprep.subr.mxu0 %v3724_v1  ;;  %3066 = vmatprep.subr.mxu1 %v3724_v1 }
 0x364   :  { %3060 = vmatpush3.msra.mxu0 %v3888_v8 }
 0x365   :  { %3061 = vmatprep.subr.mxu0 %v3724_v1 }
 0x366   :  { %3062 = vmatpush3.msra.mxu0 %v3896_v9 }
 0x367   :  { %3077 = vmatprep.subr.mxu0 %v3724_v1 }
 0x417   :  { %v500_v45 = vpop.f32.mrf.mxu0  ;;  %v573_v47 = vpop.f32.mrf.mxu1 }
 0x418   :  { %v577_v48 = vadd.f32 %v573_v47, %v506_v46  ;;  %v501_v52 = vadd.f32 %v3981_v51, %v500_v45 }
 0x419   :  { %v3021_v49 = vpop.f32.mrf.mxu0  ;;  %v3032_v50 = vpop.f32.mrf.mxu1 }
 0x41a   :  { %3319 = vtanh.f32 %v577_v48  ;;  %v2811_v59 = vmul.f32 -1.442695, %v577_v48 }
 0x41f   :  { %v671_v53 = vpop.f32.mrf.mxu0 }
 0x420   :  { %v675_v54 = vadd.f32 %v671_v53, %v501_v52 }
 0x421   :  { %v3043_v55 = vpop.f32.mrf.mxu0 }
 0x422   :  { %3321 = vtanh.f32 %v675_v54  ;;  %v2813_v60 = vmul.f32 -1.442695, %v675_v54 }
 0x423   :  { %3323 = vpow2.f32 %v2811_v59 }
 0x424   :  { %3325 = vpow2.f32 %v2813_v60 }
 0x427   :  { %v3320_v56 = vpop.eup %3319 }
 0x428   :  { %587 = vrot.lane.b32.xlu1 %v3320_v56, %s3726_s23 }
 0x42f   :  { %v3322_v57 = vpop.eup %3321 }
 0x430   :  { %689 = vrot.lane.b32.xlu0 %v3322_v57, %s3726_s23  ;;  %v3324_v61 = vpop.eup %3323 }
 0x431   :  { %v581_v62 = vadd.f32 1.0, %v3324_v61  ;;  %v3326_v63 = vpop.eup %3325 }
 0x432   :  { %v679_v0 = vadd.f32 1.0, %v3326_v63 }
 0x433   :  { %3327 = vrcp.f32 %v581_v62 }
 0x434   :  { %684 = vrot.lane.b32.xlu0 %v505_v58, %s3727_s2  ;;  %3329 = vrcp.f32 %v679_v0 }
 0x440   :  { %v3328_v2 = vpop.eup %3327 }
 0x441   :  { %v3330_v7 = vpop.eup %3329  ;;  %v585_v12 = vmul.f32 %v3328_v2, %v3919_v31 }
 0x49a   :  { %v588_v3 = vpop.permute.xlu1 %587 }
 0x49b   :  { %v590_v4 = vmul.f32 %v3328_v2, %v588_v3 }
 0x49d   :  { %592 = vrot.lane.b32.xlu1 %v590_v4, %s3727_s2 }
 0x4a2   :  { %v690_v10 = vpop.permute.xlu0 %689 }
 0x4a3   :  { %v692_v11 = vmul.f32 %v3330_v7, %v690_v10 }
 0x4a5   :  { %694 = vrot.lane.b32.xlu1 %v692_v11, %s3727_s2 }
 0x4a6   :  { %v685_v15 = vpop.permute.xlu0 %684 }
 0x4a7   :  { %v687_v16 = vmul.f32 %v3330_v7, %v685_v15 }
 0x50f   :  { %v593_v13 = vpop.permute.xlu1 %592 }
 0x510   :  { %v3990_v14 = vadd.f32 %v593_v13, %v585_v12 }
 0x512   :  { %3331 = vtanh.f32 %v3990_v14 }
 0x517   :  { %v695_v17 = vpop.permute.xlu1 %694 }
 0x518   :  { %v3993_v18 = vadd.f32 %v695_v17, %v687_v16  ;;  %v1058_v16 = vld [vmem:[#allocation2 + $0x6] sm:$0x3] }
 0x51a   :  { %3333 = vtanh.f32 %v3993_v18 }
 0x51f   :  { %v3332_v19 = vpop.eup %3331 }
 0x520   :  { %598 = vrot.lane.b32.xlu0 %v3332_v19, %s3726_s23 }
 0x527   :  { %v3334_v20 = vpop.eup %3333 }
 0x528   :  { %700 = vrot.lane.b32.xlu1 %v3334_v20, %s3726_s23 }
 0x592   :  { %v599_v21 = vpop.permute.xlu0 %598 }
 0x593   :  { %v601_v22 = vmul.f32 %v3328_v2, %v599_v21 }
 0x595   :  { %711 = vrot.lane.b32.xlu0 %v601_v22, %s3727_s2 }
 0x59a   :  { %v701_v23 = vpop.permute.xlu1 %700 }
 0x59b   :  { %v703_v24 = vmul.f32 %v3330_v7, %v701_v23 }
 0x59d   :  { %705 = vrot.lane.b32.xlu1 %v703_v24, %s3727_s2 }
 0x607   :  { %v712_v25 = vpop.permute.xlu0 %711 }
 0x608   :  { %3053 = vmatmul.mubr.msk.f32.vlgmr.msra.gmra.mxu1 %vm325_vm3, %v712_v25  ;;  %3064 = vmatmul.mubr.msk.f32.vlgmr.msra.gmra.mxu0 %vm325_vm3, %v712_v25 }
 0x609   :  { %3067 = vmatpush3.msra.mxu1 %v3940_v39  ;;  %3074 = vmatprep.mubr.msk.f32.mxu1 %vm3725_vm0, %v3724_v1 }
 0x60a   :  { %3068 = vmatprep.subr.mxu1 %v3724_v1  ;;  %3078 = vmatpush3.msra.mxu0 %v3922_v32 }
 0x60b   :  { %3069 = vmatpush3.msra.mxu1 %v3944_v41  ;;  %3079 = vmatprep.subr.mxu0 %v3724_v1 }
 0x60c   :  { %3070 = vmatprep.subr.mxu1 %v3724_v1  ;;  %3080 = vmatpush3.msra.mxu0 %v3924_v33 }
 0x60d   :  { %3071 = vmatpush3.msra.mxu1 %v3950_v42  ;;  %3081 = vmatprep.subr.mxu0 %v3724_v1 }
 0x60e   :  { %3072 = vmatprep.subr.mxu1 %v3724_v1  ;;  %3082 = vmatpush3.msra.mxu0 %v3928_v34 }
 0x60f   :  { %3073 = vmatpush3.msra.mxu1 %v3956_v43  ;;  %v706_v26 = vpop.permute.xlu1 %705  ;;  %3083 = vmatprep.subr.mxu0 %v3724_v1 }
 0x610   :  { %709 = vst.msk [vmem:[#allocation3] sm:$0x3] %vm708_vm4, %v706_v26  ;;  %3075 = vmatmul.mubr.msk.f32.vlgmr.msra.gmra.mxu1 %vm325_vm3, %v706_v26  ;;  %3088 = vmatprep.subr.mxu1 %v3724_v1 }
 0x611   :  { %3089 = vmatpush3.msra.mxu1 %v3876_v5  ;;  %3084 = vmatpush3.msra.mxu0 %v3932_v35 }
 0x612   :  { %3090 = vmatprep.subr.mxu1 %v3724_v1  ;;  %3085 = vmatprep.mubr.msk.f32.mxu0 %vm3725_vm0, %v3724_v1 }
 0x613   :  { %3091 = vmatpush3.msra.mxu1 %v3881_v6  ;;  %3096 = vmatprep.mubr.msk.f32.mxu1 %vm3725_vm0, %v3724_v1 }
 0x614   :  { %3092 = vmatprep.subr.mxu1 %v3724_v1  ;;  %3099 = vmatprep.subr.mxu0 %v3724_v1 }
 0x615   :  { %3093 = vmatpush3.msra.mxu1 %v3888_v8 }
 0x616   :  { %3094 = vmatprep.subr.mxu1 %v3724_v1 }
 0x617   :  { %3095 = vmatpush3.msra.mxu1 %v3896_v9 }
 0x618   :  { %3110 = vmatprep.subr.mxu1 %v3724_v1 }
 0x6c8   :  { %v781_v27 = vpop.f32.mrf.mxu1  ;;  %v852_v29 = vpop.f32.mrf.mxu0 }
 0x6c9   :  { %v856_v30 = vadd.f32 %v852_v29, %v785_v28  ;;  %v782_v37 = vadd.f32 %v3981_v51, %v781_v27 }
 0x6ca   :  { %v3054_v31 = vpop.f32.mrf.mxu1  ;;  %v3065_v36 = vpop.f32.mrf.mxu0 }
 0x6cb   :  { %3335 = vtanh.f32 %v856_v30  ;;  %v2816_v47 = vmul.f32 -1.442695, %v856_v30 }
 0x6d0   :  { %v949_v38 = vpop.f32.mrf.mxu1 }
 0x6d1   :  { %v953_v40 = vadd.f32 %v949_v38, %v782_v37 }
 0x6d2   :  { %v3076_v44 = vpop.f32.mrf.mxu1 }
 0x6d3   :  { %3337 = vtanh.f32 %v953_v40  ;;  %v2818_v48 = vmul.f32 -1.442695, %v953_v40 }
 0x6d4   :  { %3339 = vpow2.f32 %v2816_v47 }
 0x6d5   :  { %3341 = vpow2.f32 %v2818_v48 }
 0x6d8   :  { %v3336_v45 = vpop.eup %3335 }
 0x6d9   :  { %866 = vrot.lane.b32.xlu0 %v3336_v45, %s3726_s23 }
 0x6e0   :  { %v3338_v46 = vpop.eup %3337 }
 0x6e1   :  { %963 = vrot.lane.b32.xlu1 %v3338_v46, %s3726_s23  ;;  %v3340_v49 = vpop.eup %3339 }
 0x6e2   :  { %v860_v50 = vadd.f32 1.0, %v3340_v49  ;;  %v3342_v52 = vpop.eup %3341 }
 0x6e3   :  { %v957_v53 = vadd.f32 1.0, %v3342_v52 }
 0x6e4   :  { %3343 = vrcp.f32 %v860_v50 }
 0x6e5   :  { %3345 = vrcp.f32 %v957_v53 }
 0x6f1   :  { %v3344_v54 = vpop.eup %3343 }
 0x6f2   :  { %v3346_v57 = vpop.eup %3345  ;;  %v864_v60 = vmul.f32 %v3344_v54, %v3990_v14 }
 0x6f3   :  { %v961_v63 = vmul.f32 %v3346_v57, %v3993_v18 }
 0x74b   :  { %v867_v55 = vpop.permute.xlu0 %866 }
 0x74c   :  { %v869_v56 = vmul.f32 %v3344_v54, %v867_v55 }
 0x74e   :  { %871 = vrot.lane.b32.xlu0 %v869_v56, %s3727_s2 }
 0x753   :  { %v964_v58 = vpop.permute.xlu1 %963 }
 0x754   :  { %v966_v59 = vmul.f32 %v3346_v57, %v964_v58 }
 0x756   :  { %968 = vrot.lane.b32.xlu1 %v966_v59, %s3727_s2 }
 0x7c0   :  { %v872_v61 = vpop.permute.xlu0 %871 }
 0x7c1   :  { %v4040_v62 = vadd.f32 %v872_v61, %v864_v60 }
 0x7c3   :  { %3347 = vtanh.f32 %v4040_v62 }
 0x7c8   :  { %v969_v0 = vpop.permute.xlu1 %968 }
 0x7c9   :  { %v4044_v2 = vadd.f32 %v969_v0, %v961_v63  ;;  %v1331_v63 = vld [vmem:[#allocation2 + $0x8] sm:$0x3] }
 0x7cb   :  { %3349 = vtanh.f32 %v4044_v2 }
 0x7d0   :  { %v3348_v3 = vpop.eup %3347 }
 0x7d1   :  { %877 = vrot.lane.b32.xlu0 %v3348_v3, %s3726_s23 }
 0x7d8   :  { %v3350_v4 = vpop.eup %3349 }
 0x7d9   :  { %974 = vrot.lane.b32.xlu1 %v3350_v4, %s3726_s23 }
 0x843   :  { %v878_v7 = vpop.permute.xlu0 %877 }
 0x844   :  { %v880_v10 = vmul.f32 %v3344_v54, %v878_v7 }
 0x846   :  { %984 = vrot.lane.b32.xlu0 %v880_v10, %s3727_s2 }
 0x84b   :  { %v975_v11 = vpop.permute.xlu1 %974 }
 0x84c   :  { %v977_v12 = vmul.f32 %v3346_v57, %v975_v11 }
 0x84e   :  { %979 = vrot.lane.b32.xlu1 %v977_v12, %s3727_s2 }
 0x8b8   :  { %v985_v13 = vpop.permute.xlu0 %984 }
 0x8b9   :  { %3086 = vmatmul.mubr.msk.f32.vlgmr.msra.gmra.mxu0 %vm325_vm3, %v985_v13  ;;  %3097 = vmatmul.mubr.msk.f32.vlgmr.msra.gmra.mxu1 %vm325_vm3, %v985_v13 }
 0x8ba   :  { %3100 = vmatpush3.msra.mxu0 %v3940_v39  ;;  %3107 = vmatprep.mubr.msk.f32.mxu0 %vm3725_vm0, %v3724_v1 }
 0x8bb   :  { %3101 = vmatprep.subr.mxu0 %v3724_v1  ;;  %3111 = vmatpush3.msra.mxu1 %v3922_v32 }
 0x8bc   :  { %3102 = vmatpush3.msra.mxu0 %v3944_v41  ;;  %3112 = vmatprep.subr.mxu1 %v3724_v1 }
 0x8bd   :  { %3103 = vmatprep.subr.mxu0 %v3724_v1  ;;  %3113 = vmatpush3.msra.mxu1 %v3924_v33 }
 0x8be   :  { %3104 = vmatpush3.msra.mxu0 %v3950_v42  ;;  %3114 = vmatprep.subr.mxu1 %v3724_v1 }
 0x8bf   :  { %3105 = vmatprep.subr.mxu0 %v3724_v1  ;;  %3115 = vmatpush3.msra.mxu1 %v3928_v34 }
 0x8c0   :  { %v980_v14 = vpop.permute.xlu1 %979  ;;  %3106 = vmatpush3.msra.mxu0 %v3956_v43  ;;  %3116 = vmatprep.subr.mxu1 %v3724_v1 }
 0x8c1   :  { %982 = vst.msk [vmem:[#allocation3 + $0x2] sm:$0x3] %vm708_vm4, %v980_v14  ;;  %3108 = vmatmul.mubr.msk.f32.vlgmr.msra.gmra.mxu0 %vm325_vm3, %v980_v14  ;;  %3121 = vmatprep.subr.mxu0 %v3724_v1 }
 0x8c2   :  { %3122 = vmatpush3.msra.mxu0 %v3876_v5  ;;  %3117 = vmatpush3.msra.mxu1 %v3932_v35 }
 0x8c3   :  { %3123 = vmatprep.subr.mxu0 %v3724_v1  ;;  %3118 = vmatprep.mubr.msk.f32.mxu1 %vm3725_vm0, %v3724_v1 }
 0x8c4   :  { %3124 = vmatpush3.msra.mxu0 %v3881_v6  ;;  %3132 = vmatprep.subr.mxu1 %v3724_v1 }
 0x8c5   :  { %3125 = vmatprep.subr.mxu0 %v3724_v1  ;;  %3129 = vmatprep.mubr.msk.f32.mxu0 %vm3725_vm0, %v3724_v1 }
 0x8c6   :  { %3126 = vmatpush3.msra.mxu0 %v3888_v8 }
 0x8c7   :  { %3127 = vmatprep.subr.mxu0 %v3724_v1 }
 0x8c8   :  { %3128 = vmatpush3.msra.mxu0 %v3896_v9 }
 0x8c9   :  { %3143 = vmatprep.subr.mxu0 %v3724_v1 }
 0x979   :  { %v1054_v15 = vpop.f32.mrf.mxu0  ;;  %v1125_v17 = vpop.f32.mrf.mxu1 }
 0x97a   :  { %v1129_v18 = vadd.f32 %v1125_v17, %v1058_v16  ;;  %v1055_v21 = vadd.f32 %v3981_v51, %v1054_v15 }
 0x97b   :  { %v3087_v19 = vpop.f32.mrf.mxu0  ;;  %v3098_v20 = vpop.f32.mrf.mxu1 }
 0x97c   :  { %3351 = vtanh.f32 %v1129_v18  ;;  %v2821_v27 = vmul.f32 -1.442695, %v1129_v18 }
 0x981   :  { %v1222_v22 = vpop.f32.mrf.mxu0 }
 0x982   :  { %v1226_v23 = vadd.f32 %v1222_v22, %v1055_v21 }
 0x983   :  { %v3109_v24 = vpop.f32.mrf.mxu0 }
 0x984   :  { %3353 = vtanh.f32 %v1226_v23  ;;  %v2823_v28 = vmul.f32 -1.442695, %v1226_v23 }
 0x985   :  { %3355 = vpow2.f32 %v2821_v27 }
 0x986   :  { %3357 = vpow2.f32 %v2823_v28 }
 0x989   :  { %v3352_v25 = vpop.eup %3351 }
 0x98a   :  { %1139 = vrot.lane.b32.xlu0 %v3352_v25, %s3726_s23 }
 0x991   :  { %v3354_v26 = vpop.eup %3353 }
 0x992   :  { %1236 = vrot.lane.b32.xlu1 %v3354_v26, %s3726_s23  ;;  %v3356_v29 = vpop.eup %3355 }
 0x993   :  { %v1133_v30 = vadd.f32 1.0, %v3356_v29  ;;  %v3358_v31 = vpop.eup %3357 }
 0x994   :  { %v1230_v36 = vadd.f32 1.0, %v3358_v31 }
 0x995   :  { %3359 = vrcp.f32 %v1133_v30 }
 0x996   :  { %3361 = vrcp.f32 %v1230_v36 }
 0x9a2   :  { %v3360_v37 = vpop.eup %3359 }
 0x9a3   :  { %v3362_v44 = vpop.eup %3361  ;;  %v1137_v47 = vmul.f32 %v3360_v37, %v4040_v62 }
 0x9a4   :  { %v1234_v50 = vmul.f32 %v3362_v44, %v4044_v2 }
 0x9fc   :  { %v1140_v38 = vpop.permute.xlu0 %1139 }
 0x9fd   :  { %v1142_v40 = vmul.f32 %v3360_v37, %v1140_v38 }
 0x9ff   :  { %1144 = vrot.lane.b32.xlu0 %v1142_v40, %s3727_s2 }
 0xa04   :  { %v1237_v45 = vpop.permute.xlu1 %1236 }
 0xa05   :  { %v1239_v46 = vmul.f32 %v3362_v44, %v1237_v45 }
 0xa07   :  { %1241 = vrot.lane.b32.xlu1 %v1239_v46, %s3727_s2 }
 0xa71   :  { %v1145_v48 = vpop.permute.xlu0 %1144 }
 0xa72   :  { %v4091_v49 = vadd.f32 %v1145_v48, %v1137_v47 }
 0xa74   :  { %3363 = vtanh.f32 %v4091_v49 }
 0xa79   :  { %v1242_v52 = vpop.permute.xlu1 %1241 }
 0xa7a   :  { %v4095_v53 = vadd.f32 %v1242_v52, %v1234_v50 }
 0xa7c   :  { %3365 = vtanh.f32 %v4095_v53 }
 0xa81   :  { %v3364_v54 = vpop.eup %3363 }
 0xa82   :  { %1150 = vrot.lane.b32.xlu0 %v3364_v54, %s3726_s23 }
 0xa89   :  { %v3366_v55 = vpop.eup %3365 }
 0xa8a   :  { %1247 = vrot.lane.b32.xlu1 %v3366_v55, %s3726_s23 }
 0xaf4   :  { %v1151_v56 = vpop.permute.xlu0 %1150 }
 0xaf5   :  { %v1153_v57 = vmul.f32 %v3360_v37, %v1151_v56 }
 0xaf7   :  { %1257 = vrot.lane.b32.xlu0 %v1153_v57, %s3727_s2 }
 0xafc   :  { %v1248_v58 = vpop.permute.xlu1 %1247 }
 0xafd   :  { %v1250_v59 = vmul.f32 %v3362_v44, %v1248_v58 }
 0xaff   :  { %1252 = vrot.lane.b32.xlu1 %v1250_v59, %s3727_s2 }
 0xb69   :  { %v1258_v60 = vpop.permute.xlu0 %1257 }
 0xb6a   :  { %3119 = vmatmul.mubr.msk.f32.vlgmr.msra.gmra.mxu1 %vm325_vm3, %v1258_v60  ;;  %3130 = vmatmul.mubr.msk.f32.vlgmr.msra.gmra.mxu0 %vm325_vm3, %v1258_v60 }
 0xb6b   :  { %3133 = vmatpush3.msra.mxu1 %v3940_v39  ;;  %3140 = vmatprep.mubr.msk.f32.mxu1 %vm3725_vm0, %v3724_v1 }
 0xb6c   :  { %3134 = vmatprep.subr.mxu1 %v3724_v1  ;;  %3144 = vmatpush3.msra.mxu0 %v3922_v32 }
 0xb6d   :  { %3135 = vmatpush3.msra.mxu1 %v3944_v41  ;;  %3145 = vmatprep.subr.mxu0 %v3724_v1 }
 0xb6e   :  { %3136 = vmatprep.subr.mxu1 %v3724_v1  ;;  %3146 = vmatpush3.msra.mxu0 %v3924_v33 }
 0xb6f   :  { %3137 = vmatpush3.msra.mxu1 %v3950_v42  ;;  %3147 = vmatprep.subr.mxu0 %v3724_v1 }
 0xb70   :  { %3138 = vmatprep.subr.mxu1 %v3724_v1  ;;  %3148 = vmatpush3.msra.mxu0 %v3928_v34 }
 0xb71   :  { %3139 = vmatpush3.msra.mxu1 %v3956_v43  ;;  %v1253_v61 = vpop.permute.xlu1 %1252  ;;  %3149 = vmatprep.subr.mxu0 %v3724_v1 }
 0xb72   :  { %1255 = vst.msk [vmem:[#allocation3 + $0x4] sm:$0x3] %vm708_vm4, %v1253_v61  ;;  %3141 = vmatmul.mubr.msk.f32.vlgmr.msra.gmra.mxu1 %vm325_vm3, %v1253_v61  ;;  %3154 = vmatprep.subr.mxu1 %v3724_v1 }
 0xb73   :  { %3155 = vmatpush3.msra.mxu1 %v3876_v5  ;;  %3150 = vmatpush3.msra.mxu0 %v3932_v35 }
 0xb74   :  { %3156 = vmatprep.subr.mxu1 %v3724_v1  ;;  %3151 = vmatprep.mubr.msk.f32.mxu0 %vm3725_vm0, %v3724_v1 }
 0xb75   :  { %3157 = vmatpush3.msra.mxu1 %v3881_v6  ;;  %3162 = vmatprep.mubr.msk.f32.mxu1 %vm3725_vm0, %v3724_v1 }
 0xb76   :  { %3158 = vmatprep.subr.mxu1 %v3724_v1  ;;  %3165 = vmatprep.subr.mxu0 %v3724_v1 }
 0xb77   :  { %3159 = vmatpush3.msra.mxu1 %v3888_v8 }
 0xb78   :  { %3160 = vmatprep.subr.mxu1 %v3724_v1 }
 0xb79   :  { %3161 = vmatpush3.msra.mxu1 %v3896_v9 }
 0xb7a   :  { %3176 = vmatprep.subr.mxu1 %v3724_v1 }
 0xc2a   :  { %v1327_v62 = vpop.f32.mrf.mxu1  ;;  %v1398_v0 = vpop.f32.mrf.mxu0 }
 0xc2b   :  { %v1402_v2 = vadd.f32 %v1398_v0, %v1331_v63  ;;  %v1328_v7 = vadd.f32 %v3981_v51, %v1327_v62 }
 0xc2c   :  { %v3120_v3 = vpop.f32.mrf.mxu1  ;;  %v3131_v4 = vpop.f32.mrf.mxu0 }
 0xc2d   :  { %3367 = vtanh.f32 %v1402_v2  ;;  %v2826_v15 = vmul.f32 -1.442695, %v1402_v2 }
 0xc32   :  { %v1495_v10 = vpop.f32.mrf.mxu1 }
 0xc33   :  { %v1499_v11 = vadd.f32 %v1495_v10, %v1328_v7 }
 0xc34   :  { %v3142_v12 = vpop.f32.mrf.mxu1 }
 0xc35   :  { %3369 = vtanh.f32 %v1499_v11  ;;  %v2828_v16 = vmul.f32 -1.442695, %v1499_v11 }
 0xc36   :  { %3371 = vpow2.f32 %v2826_v15 }
 0xc37   :  { %3373 = vpow2.f32 %v2828_v16 }
 0xc3a   :  { %v3368_v13 = vpop.eup %3367 }
 0xc3b   :  { %1412 = vrot.lane.b32.xlu0 %v3368_v13, %s3726_s23 }
 0xc42   :  { %v3370_v14 = vpop.eup %3369 }
 0xc43   :  { %1509 = vrot.lane.b32.xlu1 %v3370_v14, %s3726_s23  ;;  %v3372_v17 = vpop.eup %3371 }
 0xc44   :  { %v1406_v18 = vadd.f32 1.0, %v3372_v17  ;;  %v3374_v19 = vpop.eup %3373 }
 0xc45   :  { %v1503_v20 = vadd.f32 1.0, %v3374_v19 }
 0xc46   :  { %3375 = vrcp.f32 %v1406_v18 }
 0xc47   :  { %3377 = vrcp.f32 %v1503_v20 }
 0xc53   :  { %v3376_v21 = vpop.eup %3375 }
 0xc54   :  { %v3378_v24 = vpop.eup %3377  ;;  %v1410_v27 = vmul.f32 %v3376_v21, %v4091_v49  ;;  %v1604_v49 = vld [vmem:[#allocation2 + $0xa] sm:$0x3] }
 0xc55   :  { %v1507_v30 = vmul.f32 %v3378_v24, %v4095_v53 }
 0xcad   :  { %v1413_v22 = vpop.permute.xlu0 %1412 }
 0xcae   :  { %v1415_v23 = vmul.f32 %v3376_v21, %v1413_v22 }
 0xcb0   :  { %1417 = vrot.lane.b32.xlu0 %v1415_v23, %s3727_s2 }
 0xcb5   :  { %v1510_v25 = vpop.permute.xlu1 %1509 }
 0xcb6   :  { %v1512_v26 = vmul.f32 %v3378_v24, %v1510_v25 }
 0xcb8   :  { %1514 = vrot.lane.b32.xlu1 %v1512_v26, %s3727_s2 }
 0xd22   :  { %v1418_v28 = vpop.permute.xlu0 %1417 }
 0xd23   :  { %v4142_v29 = vadd.f32 %v1418_v28, %v1410_v27 }
 0xd25   :  { %3379 = vtanh.f32 %v4142_v29 }
 0xd2a   :  { %v1515_v31 = vpop.permute.xlu1 %1514 }
 0xd2b   :  { %v4146_v36 = vadd.f32 %v1515_v31, %v1507_v30 }
 0xd2d   :  { %3381 = vtanh.f32 %v4146_v36 }
 0xd32   :  { %v3380_v37 = vpop.eup %3379 }
 0xd33   :  { %1423 = vrot.lane.b32.xlu0 %v3380_v37, %s3726_s23 }
 0xd3a   :  { %v3382_v38 = vpop.eup %3381 }
 0xd3b   :  { %1520 = vrot.lane.b32.xlu1 %v3382_v38, %s3726_s23 }
 0xda5   :  { %v1424_v40 = vpop.permute.xlu0 %1423 }
 0xda6   :  { %v1426_v44 = vmul.f32 %v3376_v21, %v1424_v40 }
 0xda8   :  { %1530 = vrot.lane.b32.xlu0 %v1426_v44, %s3727_s2 }
 0xdad   :  { %v1521_v45 = vpop.permute.xlu1 %1520 }
 0xdae   :  { %v1523_v46 = vmul.f32 %v3378_v24, %v1521_v45 }
 0xdb0   :  { %1525 = vrot.lane.b32.xlu1 %v1523_v46, %s3727_s2 }
 0xe1a   :  { %v1531_v47 = vpop.permute.xlu0 %1530 }
 0xe1b   :  { %3152 = vmatmul.mubr.msk.f32.vlgmr.msra.gmra.mxu0 %vm325_vm3, %v1531_v47  ;;  %3163 = vmatmul.mubr.msk.f32.vlgmr.msra.gmra.mxu1 %vm325_vm3, %v1531_v47 }
 0xe1c   :  { %3166 = vmatpush3.msra.mxu0 %v3940_v39  ;;  %3173 = vmatprep.mubr.msk.f32.mxu0 %vm3725_vm0, %v3724_v1 }
 0xe1d   :  { %3167 = vmatprep.subr.mxu0 %v3724_v1  ;;  %3177 = vmatpush3.msra.mxu1 %v3922_v32 }
 0xe1e   :  { %3168 = vmatpush3.msra.mxu0 %v3944_v41  ;;  %3178 = vmatprep.subr.mxu1 %v3724_v1 }
 0xe1f   :  { %3169 = vmatprep.subr.mxu0 %v3724_v1  ;;  %3179 = vmatpush3.msra.mxu1 %v3924_v33 }
 0xe20   :  { %3170 = vmatpush3.msra.mxu0 %v3950_v42  ;;  %3180 = vmatprep.subr.mxu1 %v3724_v1 }
 0xe21   :  { %3171 = vmatprep.subr.mxu0 %v3724_v1  ;;  %3181 = vmatpush3.msra.mxu1 %v3928_v34 }
 0xe22   :  { %v1526_v48 = vpop.permute.xlu1 %1525  ;;  %3172 = vmatpush3.msra.mxu0 %v3956_v43  ;;  %3182 = vmatprep.subr.mxu1 %v3724_v1 }
 0xe23   :  { %1528 = vst.msk [vmem:[#allocation3 + $0x6] sm:$0x3] %vm708_vm4, %v1526_v48  ;;  %3174 = vmatmul.mubr.msk.f32.vlgmr.msra.gmra.mxu0 %vm325_vm3, %v1526_v48  ;;  %3187 = vmatprep.subr.mxu0 %v3724_v1 }
 0xe24   :  { %3188 = vmatpush3.msra.mxu0 %v3876_v5  ;;  %3183 = vmatpush3.msra.mxu1 %v3932_v35 }
 0xe25   :  { %3189 = vmatprep.subr.mxu0 %v3724_v1  ;;  %3184 = vmatprep.mubr.msk.f32.mxu1 %vm3725_vm0, %v3724_v1 }
 0xe26   :  { %3190 = vmatpush3.msra.mxu0 %v3881_v6  ;;  %3198 = vmatprep.subr.mxu1 %v3724_v1 }
 0xe27   :  { %3191 = vmatprep.subr.mxu0 %v3724_v1  ;;  %3195 = vmatprep.mubr.msk.f32.mxu0 %vm3725_vm0, %v3724_v1 }
 0xe28   :  { %3192 = vmatpush3.msra.mxu0 %v3888_v8 }
 0xe29   :  { %3193 = vmatprep.subr.mxu0 %v3724_v1 }
 0xe2a   :  { %3194 = vmatpush3.msra.mxu0 %v3896_v9 }
 0xe2b   :  { %3209 = vmatprep.subr.mxu0 %v3724_v1 }
 0xedb   :  { %v1600_v5 = vpop.f32.mrf.mxu0  ;;  %v1671_v50 = vpop.f32.mrf.mxu1 }
 0xedc   :  { %v1675_v52 = vadd.f32 %v1671_v50, %v1604_v49  ;;  %v1601_v54 = vadd.f32 %v3981_v51, %v1600_v5 }
 0xedd   :  { %v3153_v6 = vpop.f32.mrf.mxu0  ;;  %v3164_v53 = vpop.f32.mrf.mxu1 }
 0xede   :  { %3383 = vtanh.f32 %v1675_v52  ;;  %v2831_v9 = vmul.f32 -1.442695, %v1675_v52 }
 0xee3   :  { %v1768_v55 = vpop.f32.mrf.mxu0 }
 0xee4   :  { %v1772_v56 = vadd.f32 %v1768_v55, %v1601_v54 }
 0xee5   :  { %v3175_v57 = vpop.f32.mrf.mxu0 }
 0xee6   :  { %3385 = vtanh.f32 %v1772_v56  ;;  %v2833_v59 = vmul.f32 -1.442695, %v1772_v56 }
 0xee7   :  { %3387 = vpow2.f32 %v2831_v9 }
 0xee8   :  { %3389 = vpow2.f32 %v2833_v59 }
 0xeeb   :  { %v3384_v8 = vpop.eup %3383 }
 0xeec   :  { %1685 = vrot.lane.b32.xlu0 %v3384_v8, %s3726_s23 }
 0xef3   :  { %v3386_v58 = vpop.eup %3385 }
 0xef4   :  { %1782 = vrot.lane.b32.xlu1 %v3386_v58, %s3726_s23  ;;  %v3388_v60 = vpop.eup %3387 }
 0xef5   :  { %v1679_v61 = vadd.f32 1.0, %v3388_v60  ;;  %v3390_v62 = vpop.eup %3389 }
 0xef6   :  { %v1776_v63 = vadd.f32 1.0, %v3390_v62  ;;  %v3447_v62 = vld [vmem:[#allocation18 + $0x18] sm:$0xff] }
 0xef7   :  { %3391 = vrcp.f32 %v1679_v61 }
 0xef8   :  { %3393 = vrcp.f32 %v1776_v63  ;;  %v3448_v63 = vld [vmem:[#allocation16 + $0x18] sm:$0xff] }
 0xf04   :  { %v3392_v0 = vpop.eup %3391 }
 0xf05   :  { %v3394_v4 = vpop.eup %3393  ;;  %v1683_v11 = vmul.f32 %v3392_v0, %v4142_v29 }
 0xf06   :  { %v1780_v14 = vmul.f32 %v3394_v4, %v4146_v36 }
 0xf5e   :  { %v1686_v2 = vpop.permute.xlu0 %1685 }
 0xf5f   :  { %v1688_v3 = vmul.f32 %v3392_v0, %v1686_v2  ;;  %v3450_v2 = vld [vmem:[#allocation16 + $0x10] sm:$0xff] }
 0xf61   :  { %1690 = vrot.lane.b32.xlu0 %v1688_v3, %s3727_s2  ;;  %v3451_v3 = vld [vmem:[#allocation18 + $0x8] sm:$0xff] }
 0xf66   :  { %v1783_v7 = vpop.permute.xlu1 %1782 }
 0xf67   :  { %v1785_v10 = vmul.f32 %v3394_v4, %v1783_v7 }
 0xf69   :  { %1787 = vrot.lane.b32.xlu1 %v1785_v10, %s3727_s2  ;;  %v3453_v10 = vld [vmem:[#allocation18] sm:$0xff] }
 0xfd3   :  { %v1691_v12 = vpop.permute.xlu0 %1690 }
 0xfd4   :  { %v4193_v13 = vadd.f32 %v1691_v12, %v1683_v11  ;;  %v3454_v11 = vld [vmem:[#allocation16] sm:$0xff] }
 0xfd6   :  { %3395 = vtanh.f32 %v4193_v13 }
 0xfdb   :  { %v1788_v15 = vpop.permute.xlu1 %1787 }
 0xfdc   :  { %v4197_v16 = vadd.f32 %v1788_v15, %v1780_v14 }
 0xfde   :  { %3397 = vtanh.f32 %v4197_v16 }
 0xfe3   :  { %v3396_v17 = vpop.eup %3395 }
 0xfe4   :  { %1696 = vrot.lane.b32.xlu0 %v3396_v17, %s3726_s23 }
 0xfeb   :  { %v3398_v18 = vpop.eup %3397 }
 0xfec   :  { %1793 = vrot.lane.b32.xlu1 %v3398_v18, %s3726_s23  ;;  %v3455_v18 = vld [vmem:[#allocation19] ss:$0 sm:$0xff] }
0x1056   :  { %v1697_v19 = vpop.permute.xlu0 %1696 }
0x1057   :  { %v1699_v20 = vmul.f32 %v3392_v0, %v1697_v19  ;;  %v3449_v0 = vld [vmem:[#allocation18 + $0x10] sm:$0xff] }
0x1059   :  { %1803 = vrot.lane.b32.xlu0 %v1699_v20, %s3727_s2 }
0x105e   :  { %v1794_v21 = vpop.permute.xlu1 %1793 }
0x105f   :  { %v1796_v22 = vmul.f32 %v3394_v4, %v1794_v21  ;;  %v3452_v4 = vld [vmem:[#allocation16 + $0x8] sm:$0xff] }
0x1061   :  { %1798 = vrot.lane.b32.xlu1 %v1796_v22, %s3727_s2 }
0x10cb   :  { %v1804_v23 = vpop.permute.xlu0 %1803 }
0x10cc   :  { %3185 = vmatmul.mubr.msk.f32.vlgmr.msra.gmra.mxu1 %vm325_vm3, %v1804_v23  ;;  %3196 = vmatmul.mubr.msk.f32.vlgmr.msra.gmra.mxu0 %vm325_vm3, %v1804_v23 }
0x10cd   :  { %3199 = vmatpush3.msra.mxu1 %v3940_v39  ;;  %3206 = vmatprep.mubr.msk.f32.mxu1 %vm3725_vm0, %v3724_v1 }
0x10ce   :  { %3200 = vmatprep.subr.mxu1 %v3724_v1  ;;  %3210 = vmatpush3.msra.mxu0 %v3922_v32  ;;  %v3443_v32 = vld [vmem:[%s4345_s6 + $0x18] sm:$0xff] }
0x10cf   :  { %3201 = vmatpush3.msra.mxu1 %v3944_v41  ;;  %3211 = vmatprep.subr.mxu0 %v3724_v1 }
0x10d0   :  { %3202 = vmatprep.subr.mxu1 %v3724_v1  ;;  %3212 = vmatpush3.msra.mxu0 %v3924_v33  ;;  %v3444_v33 = vld [vmem:[%s4345_s6 + $0x10] sm:$0xff] }
0x10d1   :  { %3203 = vmatpush3.msra.mxu1 %v3950_v42  ;;  %3213 = vmatprep.subr.mxu0 %v3724_v1  ;;  %v1877_v42 = vld [vmem:[#allocation2 + $0xc] sm:$0x3] }
0x10d2   :  { %3204 = vmatprep.subr.mxu1 %v3724_v1  ;;  %3214 = vmatpush3.msra.mxu0 %v3928_v34  ;;  %v3445_v34 = vld [vmem:[%s4345_s6 + $0x8] sm:$0xff] }
0x10d3   :  { %3205 = vmatpush3.msra.mxu1 %v3956_v43  ;;  %v1799_v39 = vpop.permute.xlu1 %1798  ;;  %3215 = vmatprep.subr.mxu0 %v3724_v1 }
0x10d4   :  { %1801 = vst.msk [vmem:[#allocation3 + $0x8] sm:$0x3] %vm708_vm4, %v1799_v39  ;;  %3207 = vmatmul.mubr.msk.f32.vlgmr.msra.gmra.mxu1 %vm325_vm3, %v1799_v39  ;;  %3220 = vmatprep.subr.mxu1 %v3724_v1 }
0x10d5   :  { %3221 = vmatpush3.msra.mxu1 %v3443_v32  ;;  %3216 = vmatpush3.msra.mxu0 %v3932_v35  ;;  %v3446_v35 = vld [vmem:[%s4345_s6] sm:$0xff] }
0x10d6   :  { %3222 = vmatprep.subr.mxu1 %v3724_v1  ;;  %3217 = vmatprep.mubr.msk.f32.mxu0 %vm3725_vm0, %v3724_v1 }
0x10d7   :  { %3223 = vmatpush3.msra.mxu1 %v3444_v33  ;;  %3228 = vmatprep.mubr.msk.f32.mxu1 %vm3725_vm0, %v3724_v1 }
0x10d8   :  { %3224 = vmatprep.subr.mxu1 %v3724_v1  ;;  %3231 = vmatprep.subr.mxu0 %v3724_v1 }
0x10d9   :  { %3225 = vmatpush3.msra.mxu1 %v3445_v34 }
0x10da   :  { %3226 = vmatprep.subr.mxu1 %v3724_v1 }
0x10db   :  { %3227 = vmatpush3.msra.mxu1 %v3446_v35 }
0x10dc   :  { %3242 = vmatprep.subr.mxu1 %v3724_v1 }
0x118c   :  { %v1873_v41 = vpop.f32.mrf.mxu1  ;;  %v1944_v43 = vpop.f32.mrf.mxu0 }
0x118d   :  { %v1948_v24 = vadd.f32 %v1944_v43, %v1877_v42  ;;  %v1874_v27 = vadd.f32 %v3981_v51, %v1873_v41 }
0x118e   :  { %v3186_v25 = vpop.f32.mrf.mxu1  ;;  %v3197_v26 = vpop.f32.mrf.mxu0 }
0x118f   :  { %3399 = vtanh.f32 %v1948_v24  ;;  %v2836_v37 = vmul.f32 -1.442695, %v1948_v24 }
0x1194   :  { %v2041_v28 = vpop.f32.mrf.mxu1 }
0x1195   :  { %v2045_v29 = vadd.f32 %v2041_v28, %v1874_v27 }
0x1196   :  { %v3208_v30 = vpop.f32.mrf.mxu1 }
0x1197   :  { %3401 = vtanh.f32 %v2045_v29  ;;  %v2838_v38 = vmul.f32 -1.442695, %v2045_v29 }
0x1198   :  { %3403 = vpow2.f32 %v2836_v37 }
0x1199   :  { %3405 = vpow2.f32 %v2838_v38 }
0x119c   :  { %v3400_v31 = vpop.eup %3399 }
0x119d   :  { %1958 = vrot.lane.b32.xlu0 %v3400_v31, %s3726_s23 }
0x11a4   :  { %v3402_v36 = vpop.eup %3401 }
0x11a5   :  { %2055 = vrot.lane.b32.xlu1 %v3402_v36, %s3726_s23  ;;  %v3404_v40 = vpop.eup %3403 }
0x11a6   :  { %v1952_v44 = vadd.f32 1.0, %v3404_v40  ;;  %v3406_v45 = vpop.eup %3405 }
0x11a7   :  { %v2049_v46 = vadd.f32 1.0, %v3406_v45 }
0x11a8   :  { %3407 = vrcp.f32 %v1952_v44 }
0x11a9   :  { %3409 = vrcp.f32 %v2049_v46 }
0x11b5   :  { %v3408_v51 = vpop.eup %3407 }
0x11b6   :  { %v3410_v5 = vpop.eup %3409  ;;  %v1956_v52 = vmul.f32 %v3408_v51, %v4193_v13  ;;  %v2150_v13 = vld [vmem:[#allocation2 + $0xe] sm:$0x3] }
0x11b7   :  { %v2053_v54 = vmul.f32 %v3410_v5, %v4197_v16 }
0x120f   :  { %v1959_v47 = vpop.permute.xlu0 %1958 }
0x1210   :  { %v1961_v48 = vmul.f32 %v3408_v51, %v1959_v47 }
0x1212   :  { %1963 = vrot.lane.b32.xlu0 %v1961_v48, %s3727_s2 }
0x1217   :  { %v2056_v49 = vpop.permute.xlu1 %2055 }
0x1218   :  { %v2058_v50 = vmul.f32 %v3410_v5, %v2056_v49 }
0x121a   :  { %2060 = vrot.lane.b32.xlu1 %v2058_v50, %s3727_s2 }
0x1284   :  { %v1964_v6 = vpop.permute.xlu0 %1963 }
0x1285   :  { %v4252_v53 = vadd.f32 %v1964_v6, %v1956_v52 }
0x1287   :  { %3411 = vtanh.f32 %v4252_v53 }
0x128c   :  { %v2061_v55 = vpop.permute.xlu1 %2060 }
0x128d   :  { %v4256_v56 = vadd.f32 %v2061_v55, %v2053_v54 }
0x128f   :  { %3413 = vtanh.f32 %v4256_v56 }
0x1294   :  { %v3412_v57 = vpop.eup %3411 }
0x1295   :  { %1969 = vrot.lane.b32.xlu0 %v3412_v57, %s3726_s23 }
0x129c   :  { %v3414_v8 = vpop.eup %3413 }
0x129d   :  { %2066 = vrot.lane.b32.xlu1 %v3414_v8, %s3726_s23 }
0x1307   :  { %v1970_v58 = vpop.permute.xlu0 %1969 }
0x1308   :  { %v1972_v9 = vmul.f32 %v3408_v51, %v1970_v58 }
0x130a   :  { %2076 = vrot.lane.b32.xlu0 %v1972_v9, %s3727_s2 }
0x130f   :  { %v2067_v59 = vpop.permute.xlu1 %2066 }
0x1310   :  { %v2069_v60 = vmul.f32 %v3410_v5, %v2067_v59  ;;  %v2525_v5 = vld [vmem:[#allocation3] sm:$0xff] }
0x1312   :  { %2071 = vrot.lane.b32.xlu1 %v2069_v60, %s3727_s2 }
0x137c   :  { %v2077_v61 = vpop.permute.xlu0 %2076 }
0x137d   :  { %3218 = vmatmul.mubr.msk.f32.vlgmr.msra.gmra.mxu0 %vm325_vm3, %v2077_v61  ;;  %3229 = vmatmul.mubr.msk.f32.vlgmr.msra.gmra.mxu1 %vm325_vm3, %v2077_v61 }
0x137e   :  { %3232 = vmatpush3.msra.mxu0 %v3447_v62  ;;  %3239 = vmatprep.mubr.msk.f32.mxu0 %vm3725_vm0, %v3724_v1 }
0x137f   :  { %3233 = vmatprep.subr.mxu0 %v3724_v1  ;;  %3243 = vmatpush3.msra.mxu1 %v3448_v63 }
0x1380   :  { %3234 = vmatpush3.msra.mxu0 %v3449_v0  ;;  %3244 = vmatprep.subr.mxu1 %v3724_v1 }
0x1381   :  { %3235 = vmatprep.subr.mxu0 %v3724_v1  ;;  %3245 = vmatpush3.msra.mxu1 %v3450_v2  ;;  %v2530_v2 = vld [vmem:[%s4350_s11 + $0x18] sm:$0xff] }
0x1382   :  { %3236 = vmatpush3.msra.mxu0 %v3451_v3  ;;  %3246 = vmatprep.subr.mxu1 %v3724_v1 }
0x1383   :  { %3237 = vmatprep.subr.mxu0 %v3724_v1  ;;  %3247 = vmatpush3.msra.mxu1 %v3452_v4  ;;  %v2528_v4 = vld [vmem:[%s4350_s11 + $0x8] sm:$0xff] }
0x1384   :  { %v2072_v7 = vpop.permute.xlu1 %2071  ;;  %3238 = vmatpush3.msra.mxu0 %v3453_v10  ;;  %3248 = vmatprep.subr.mxu1 %v3724_v1 }
0x1385   :  { %2074 = vst.msk [vmem:[#allocation3 + $0xa] sm:$0x3] %vm708_vm4, %v2072_v7  ;;  %3240 = vmatmul.mubr.msk.f32.vlgmr.msra.gmra.mxu0 %vm325_vm3, %v2072_v7  ;;  %3249 = vmatpush3.msra.mxu1 %v3454_v11  ;;  %v2527_v7 = vld [vmem:[%s4350_s11] sm:$0xff] }
0x1386   :  { %3250 = vmatprep.mubr.msk.f32.mxu1 %vm3725_vm0, %v3724_v1  ;;  %3253 = vmatprep.subr.mxu0 %v3724_v1 }
0x1387   :  { %3254 = vmatpush3.msra.mxu0 %v3447_v62  ;;  %3261 = vmatprep.mubr.msk.f32.mxu0 %vm3725_vm0, %v3724_v1 }
0x1388   :  { %3255 = vmatprep.subr.mxu0 %v3724_v1  ;;  %3264 = vmatprep.subr.mxu1 %v2530_v2 }
0x1389   :  { %3256 = vmatpush3.msra.mxu0 %v3449_v0 }
0x138a   :  { %3257 = vmatprep.subr.mxu0 %v3724_v1 }
0x138b   :  { %3258 = vmatpush3.msra.mxu0 %v3451_v3  ;;  %v2529_v3 = vld [vmem:[%s4350_s11 + $0x10] sm:$0xff] }
0x138c   :  { %3259 = vmatprep.subr.mxu0 %v3724_v1 }
0x138d   :  { %3260 = vmatpush3.msra.mxu0 %v3453_v10 }
0x143d   :  { %v2146_v12 = vpop.f32.mrf.mxu0  ;;  %v2217_v14 = vpop.f32.mrf.mxu1 }
0x143e   :  { %v2221_v15 = vadd.f32 %v2217_v14, %v2150_v13  ;;  %v2147_v19 = vadd.f32 %v3455_v18, %v2146_v12  ;;  %v2624_v14 = vld [vmem:[%s4352_s13 + $0x18] sm:$0xff] }
0x143f   :  { %v3219_v16 = vpop.f32.mrf.mxu0  ;;  %v3230_v17 = vpop.f32.mrf.mxu1  ;;  %3275 = vmatprep.subr.mxu0 %v2624_v14 }
0x1440   :  { %3415 = vtanh.f32 %v2221_v15  ;;  %v2841_v32 = vmul.f32 -1.442695, %v2221_v15  ;;  %v2623_v15 = vld [vmem:[%s4352_s13 + $0x10] sm:$0xff]  ;;  %v2622_v16 = vld [vmem:[%s4352_s13 + $0x8] sm:$0xff]  ;;  %v2621_v17 = vld [vmem:[%s4352_s13] sm:$0xff] }
0x1445   :  { %v2314_v20 = vpop.f32.mrf.mxu0 }
0x1446   :  { %v2318_v21 = vadd.f32 %v2314_v20, %v2147_v19 }
0x1447   :  { %v3241_v22 = vpop.f32.mrf.mxu0 }
0x1448   :  { %3417 = vtanh.f32 %v2318_v21  ;;  %v2843_v33 = vmul.f32 -1.442695, %v2318_v21 }
0x1449   :  { %3419 = vpow2.f32 %v2841_v32  ;;  %v2850_v32 = vld [vmem:[#allocation4] ss:$0 sm:$0xff] }
0x144a   :  { %3421 = vpow2.f32 %v2843_v33 }
0x144d   :  { %v3416_v23 = vpop.eup %3415 }
0x144e   :  { %2231 = vrot.lane.b32.xlu0 %v3416_v23, %s3726_s23 }
0x1455   :  { %v3418_v39 = vpop.eup %3417 }
0x1456   :  { %2328 = vrot.lane.b32.xlu1 %v3418_v39, %s3726_s23  ;;  %v3420_v34 = vpop.eup %3419 }
0x1457   :  { %v2225_v35 = vadd.f32 1.0, %v3420_v34  ;;  %v3422_v41 = vpop.eup %3421 }
0x1458   :  { %v2322_v42 = vadd.f32 1.0, %v3422_v41 }
0x1459   :  { %3423 = vrcp.f32 %v2225_v35 }
0x145a   :  { %3425 = vrcp.f32 %v2322_v42  ;;  %v2713_v42 = vld [vmem:[#allocation22] sm:$0xff] }
0x1466   :  { %v3424_v43 = vpop.eup %3423 }
0x1467   :  { %v3426_v26 = vpop.eup %3425  ;;  %v2229_v29 = vmul.f32 %v3424_v43, %v4252_v53 }
0x1468   :  { %v2326_v36 = vmul.f32 %v3426_v26, %v4256_v56 }
0x14c0   :  { %v2232_v24 = vpop.permute.xlu0 %2231 }
0x14c1   :  { %v2234_v25 = vmul.f32 %v3424_v43, %v2232_v24 }
0x14c3   :  { %2236 = vrot.lane.b32.xlu0 %v2234_v25, %s3727_s2 }
0x14c8   :  { %v2329_v27 = vpop.permute.xlu1 %2328 }
0x14c9   :  { %v2331_v28 = vmul.f32 %v3426_v26, %v2329_v27 }
0x14cb   :  { %2333 = vrot.lane.b32.xlu1 %v2331_v28, %s3727_s2 }
0x1535   :  { %v2237_v30 = vpop.permute.xlu0 %2236 }
0x1536   :  { %v2239_v31 = vadd.f32 %v2237_v30, %v2229_v29 }
0x1538   :  { %3427 = vtanh.f32 %v2239_v31 }
0x153d   :  { %v2334_v37 = vpop.permute.xlu1 %2333 }
0x153e   :  { %v2336_v38 = vadd.f32 %v2334_v37, %v2326_v36 }
0x1540   :  { %3429 = vtanh.f32 %v2336_v38 }
0x1545   :  { %v3428_v40 = vpop.eup %3427 }
0x1546   :  { %2242 = vrot.lane.b32.xlu0 %v3428_v40, %s3726_s23 }
0x154d   :  { %v3430_v44 = vpop.eup %3429 }
0x154e   :  { %2339 = vrot.lane.b32.xlu1 %v3430_v44, %s3726_s23 }
0x15b8   :  { %v2243_v45 = vpop.permute.xlu0 %2242 }
0x15b9   :  { %v2245_v46 = vmul.f32 %v3424_v43, %v2243_v45  ;;  %v2714_v43 = vld [vmem:[%s4355_s16] sm:$0xff] }
0x15bb   :  { %2349 = vrot.lane.b32.xlu0 %v2245_v46, %s3727_s2 }
0x15c0   :  { %v2340_v51 = vpop.permute.xlu1 %2339 }
0x15c1   :  { %v2342_v47 = vmul.f32 %v3426_v26, %v2340_v51 }
0x15c3   :  { %2344 = vrot.lane.b32.xlu1 %v2342_v47, %s3727_s2 }
0x162d   :  { %v2350_v48 = vpop.permute.xlu0 %2349 }
0x162e   :  { %3251 = vmatmul.mubr.msk.f32.vlgmr.msra.gmra.mxu1 %vm325_vm3, %v2350_v48 }
0x162f   :  { %3272 = vmatprep.mubr.msk.f32.mxu1 %vm325_vm3, %v2525_v5  ;;  %3265 = vmatpush3.msra.mxu1 %v2530_v2 }
0x1630   :  { %3266 = vmatprep.subr.mxu1 %v2529_v3 }
0x1631   :  { %3267 = vmatpush3.msra.mxu1 %v2529_v3 }
0x1632   :  { %3268 = vmatprep.subr.mxu1 %v2528_v4 }
0x1633   :  { %3269 = vmatpush3.msra.mxu1 %v2528_v4 }
0x1634   :  { %3270 = vmatprep.subr.mxu1 %v2527_v7 }
0x1635   :  { %v2345_v49 = vpop.permute.xlu1 %2344  ;;  %3271 = vmatpush3.msra.mxu1 %v2527_v7 }
0x1636   :  { %2347 = vst.msk [vmem:[#allocation3 + $0xc] sm:$0x3] %vm708_vm4, %v2345_v49  ;;  %3262 = vmatmul.mubr.msk.f32.vlgmr.msra.gmra.mxu0 %vm325_vm3, %v2345_v49  ;;  %3286 = vmatprep.subr.mxu1 %v3724_v1 }
0x1637   :  { %3276 = vmatpush3.msra.mxu0 %v2624_v14 }
0x1638   :  { %3277 = vmatprep.subr.mxu0 %v2623_v15 }
0x1639   :  { %3278 = vmatpush3.msra.mxu0 %v2623_v15 }
0x163a   :  { %3279 = vmatprep.subr.mxu0 %v2622_v16 }
0x163b   :  { %3280 = vmatpush3.msra.mxu0 %v2622_v16 }
0x163c   :  { %3281 = vmatprep.subr.mxu0 %v2621_v17 }
0x163d   :  { %3282 = vmatpush3.msra.mxu0 %v2621_v17 }
0x16ee   :  { %v2419_v50 = vpop.f32.mrf.mxu1 }
0x16ef   :  { %v2420_v6 = vadd.f32 %v3455_v18, %v2419_v50  ;;  %v2847_v18 = vld [vmem:[#allocation21] ss:$0 sm:$0xff] }
0x16f0   :  { %v3252_v52 = vpop.f32.mrf.mxu1 }
0x16f6   :  { %v2491_v53 = vpop.f32.mrf.mxu0 }
0x16f7   :  { %v2495_v54 = vadd.f32 %v2491_v53, %v2420_v6 }
0x16f8   :  { %v3263_v55 = vpop.f32.mrf.mxu0 }
0x16f9   :  { %3431 = vtanh.f32 %v2495_v54  ;;  %v2846_v57 = vmul.f32 -1.442695, %v2495_v54 }
0x16fb   :  { %3433 = vpow2.f32 %v2846_v57 }
0x1706   :  { %v3432_v56 = vpop.eup %3431 }
0x1707   :  { %2505 = vrot.lane.b32.xlu0 %v3432_v56, %s3726_s23 }
0x1708   :  { %v3434_v8 = vpop.eup %3433 }
0x1709   :  { %v2499_v58 = vadd.f32 1.0, %v3434_v8 }
0x170b   :  { %3435 = vrcp.f32 %v2499_v58 }
0x1718   :  { %v3436_v9 = vpop.eup %3435 }
0x1719   :  { %v2503_v61 = vmul.f32 %v3436_v9, %v2336_v38 }
0x1779   :  { %v2506_v59 = vpop.permute.xlu0 %2505 }
0x177a   :  { %v2508_v60 = vmul.f32 %v3436_v9, %v2506_v59 }
0x177c   :  { %2510 = vrot.lane.b32.xlu1 %v2508_v60, %s3727_s2 }
0x17ee   :  { %v2511_v62 = vpop.permute.xlu1 %2510 }
0x17ef   :  { %v2513_v63 = vadd.f32 %v2511_v62, %v2503_v61 }
0x17f1   :  { %3437 = vtanh.f32 %v2513_v63 }
0x17fe   :  { %v3438_v0 = vpop.eup %3437 }
0x17ff   :  { %2516 = vrot.lane.b32.xlu0 %v3438_v0, %s3726_s23 }
0x1871   :  { %v2517_v10 = vpop.permute.xlu0 %2516 }
0x1872   :  { %v2519_v11 = vmul.f32 %v3436_v9, %v2517_v10 }
0x1874   :  { %2521 = vrot.lane.b32.xlu1 %v2519_v11, %s3727_s2 }
0x18e6   :  { %v2522_v12 = vpop.permute.xlu1 %2521 }
0x18e7   :  { %2524 = vst.msk [vmem:[#allocation3 + $0xe] sm:$0x3] %vm708_vm4, %v2522_v12 }
0x18ee   :  { %v2526_v13 = vld [vmem:[#allocation3 + $0x8] sm:$0xff] }
0x18ef   :  { %3273 = vmatmul.mubr.msk.f32.vlgmr.msra.gmra.mxu1 %vm325_vm3, %v2526_v13 }
0x18f0   :  { %3290 = vmatprep.mubr.msk.f32.mxu1 %vm3725_vm0, %v3724_v1 }
0x19af   :  { %v3274_v19 = vpop.f32.mrf.mxu1 }
0x19b0   :  { %v2616_v20 = vadd.f32 %v3274_v19, %v2847_v18 }
0x19b1   :  { %v2610_v21 = vpop.f32.mrf.mxu1 }
0x19b2   :  { %v2611_v22 = vadd.f32 %v2847_v18, %v2610_v21 }
0x19b4   :  { %3439 = vtanh.f32 %v2611_v22 }
0x19b5   :  { %3441 = vtanh.f32 %v2616_v20 }
0x19c1   :  { %v3440_v23 = vpop.eup %3439 }
0x19c2   :  { %v3442_v39 = vpop.eup %3441  ;;  %3283 = vmatprep.mubr.msk.f32.mxu0 %vm325_vm3, %v3440_v23 }
0x19c3   :  { %3284 = vmatmul.mubr.msk.f32.vlgmr.msra.gmra.mxu0 %vm325_vm3, %v3442_v39 }
0x1a83   :  { %v3285_v33 = vpop.f32.mrf.mxu0 }
0x1a84   :  { %v2710_v34 = vadd.f32 %v3285_v33, %v2850_v32 }
0x1a85   :  { %v2704_v35 = vpop.f32.mrf.mxu0 }
0x1a86   :  { %v2705_v41 = vadd.f32 %v2850_v32, %v2704_v35  ;;  %3287 = vmatpush3.msra.mxu1 %v2710_v34 }
0x1a87   :  { %3288 = vmatprep.subr.mxu1 %v3724_v1 }
0x1a88   :  { %3289 = vmatpush3.msra.mxu1 %v2705_v41 }
0x1a89   :  { %3291 = vmatmul.mubr.msk.f32.vlgmr.msra.gmra.mxu1 %vm2715_vm5, %v2713_v42 }
0x1b49   :  { %v2785_v24 = vpop.f32.mrf.mxu1 }
0x1b4a   :  { %v2786_v25 = vadd.f32 %v2785_v24, %v2714_v43 }
0x1b4b   :  { %v3292_v26 = vpop.f32.mrf.mxu1 }
0x1b4c   :  { %2790 = vst.msk [vmem:[%s4356_s17] sm:$0xff] %vm2789_vm6, %v2786_v25 }
0x1b4d   :  { %2795 = vsyncpa [#allocation6], 1 }
0x1b4e   :  { %2796 = vsyncpa [#allocation8], 1 }
0x1b4f   :  { %2797 = vsyncpa [#allocation11], 1 }
0x1b50   :  { %2798 = vsyncpa [#allocation14], 1 }
0x1b51   :  { %2799 = vsyncpa [#allocation17], 1 }
0x1b52   :  { %2800 = vsyncpa [#allocation20], 1 }
0x1b53   :  { %2801 = vsyncpa [#allocation23], 1 }

</bundles_post_ra>
